<compile_context>
chip_gen: v5e
topology: v5e:2x2
jax: 0.10.0
libtpu: 0.0.40
codegen_flags: <defaults>
</compile_context>

<pallas_src>
import functools

import jax
import jax.numpy as jnp
from jax.experimental import pallas as pl
from jax.experimental.pallas import tpu as pltpu

LAYERS = [2, 64, 64, 64, 1]
T_FINAL = 0.3


def _cdiv(a, b):
    return -(-a // b)


def _round_up(a, m):
    return _cdiv(a, m) * m


def _pinn_kernel(x_ref, t_ref,
                 w1x_ref, w1t_ref, b1_ref,
                 w2_ref, b2_ref,
                 w3_ref, b3_ref,
                 w4_ref, b4_ref,
                 out_ref):
    # x/t tiles: (1, tile) — samples on lanes.
    x = x_ref[...]
    t = t_ref[...]

    # Layer 1 (2 -> 64): two rank-1 broadcast multiply-adds on the VPU.
    #   (64,1)*(1,tile) + (64,1)*(1,tile) + (64,1)  ->  (64, tile)
    h = jnp.tanh(w1x_ref[...] * x + w1t_ref[...] * t + b1_ref[...])

    # Layers 2, 3 (64 -> 64): MXU matmuls.  w2/w3 arrive in the MXU dtype
    # chosen by the wrapper (bf16 by default -> single-pass MXU); the
    # activation is cast to match; accumulation is always f32.
    mxu_dt = w2_ref.dtype
    h = jnp.tanh(
        jnp.dot(w2_ref[...], h.astype(mxu_dt),
                preferred_element_type=jnp.float32) + b2_ref[...])
    h = jnp.tanh(
        jnp.dot(w3_ref[...], h.astype(mxu_dt),
                preferred_element_type=jnp.float32) + b3_ref[...])

    # Output layer (64 -> 1): VPU multiply + sublane (XLU) reduction ->
    # lane-dense (1, tile) row, stored unmasked along lanes.
    out_ref[...] = (
        jnp.sum(w4_ref[...] * h, axis=0, keepdims=True)
        + b4_ref[...]).astype(out_ref.dtype)


@functools.partial(jax.jit, static_argnames=("tile_n", "mxu_bf16"))
def pinn_forward(x, t, params, *, tile_n=8192, mxu_bf16=True):
    """x: (N, 1) f32, t: (N, 1) f32 -> (N, 1) f32 (same semantics as PINN.forward).

    params: list of (W, b) in PyTorch layout — W: (out, in), b: (out, 1).
    mxu_bf16: cast the 64x64 hidden-layer matmul operands to bf16 (fast,
      single-pass MXU path on all TPU generations); accumulation and all other
      math stay f32.  Set False for the full-f32 path (~2e-5 reference match).
    tile_n: max samples per grid step.  8192 keeps per-step compute >> the
      ~0.35us grid-step overhead at ~10 MiB of VMEM scratch.  On single-TC
      v5e/v6e it can be raised to 16-32K; keep <= 16384 on v7x (64 MiB VMEM).
    """
    n = x.shape[0]
    (w1, b1), (w2, b2), (w3, b3), (w4, b4) = params
    assert tile_n % 128 == 0, "tile_n must be a multiple of the 128-lane width"

    # --- tile / grid selection --------------------------------------------
    # g grid steps, each a lane-dense tile of `tile` samples.  Padding waste
    # is < 128 samples per step (not a whole tile_n).  A single-tile problem
    # with n >= 1024 is split in two so the "parallel" grid axis can feed
    # both v7x TensorCores (one extra ~0.35us step on single-TC chips).
    g = _cdiv(n, tile_n)
    if g == 1 and n >= 1024:
        g = 2
    tile = _round_up(_cdiv(n, g), 128)
    n_pad = g * tile

    # --- kernel-layout parameter views (tiny, built once per compile) ------
    mxu_dt = jnp.bfloat16 if mxu_bf16 else jnp.float32
    w1x = w1[:, 0:1]                 # (64, 1) — weight column multiplying x
    w1t = w1[:, 1:2]                 # (64, 1) — weight column multiplying t
    w2k = w2.astype(mxu_dt)          # (64, 64)
    w3k = w3.astype(mxu_dt)          # (64, 64)
    w4t = w4.T                       # (64, 1) — output weights as a column
    # b1/b2/b3: (64, 1); b4: (1, 1) — broadcast along lanes inside the kernel.

    xr = x.reshape(1, n)
    tr = t.reshape(1, n)
    if n_pad != n:
        pad = ((0, 0), (0, n_pad - n))
        xr = jnp.pad(xr, pad)
        tr = jnp.pad(tr, pad)

    def param_spec(arr):
        # Grid-invariant parameter tile: constant block index -> stays
        # resident in VMEM across the whole grid (no per-step re-DMA).
        nd = arr.ndim
        return pl.BlockSpec(arr.shape, lambda i, _nd=nd: (0,) * _nd)

    # Scoped-VMEM budget: ~1 KiB per lane of tile for the (64, tile)
    # intermediates + I/O double buffers; capped under v7x's 64 MiB physical.
    vmem_bytes = int(min(64 << 20, max(32 << 20, 1536 * tile)))

    out_row = pl.pallas_call(
        _pinn_kernel,
        out_shape=jax.ShapeDtypeStruct((1, n_pad), jnp.float32),
        grid_spec=pltpu.PrefetchScalarGridSpec(
            num_scalar_prefetch=0,
            grid=(g,),
            in_specs=[
                pl.BlockSpec((1, tile), lambda i: (0, i)),   # x row tile
                pl.BlockSpec((1, tile), lambda i: (0, i)),   # t row tile
                param_spec(w1x), param_spec(w1t), param_spec(b1),
                param_spec(w2k), param_spec(b2),
                param_spec(w3k), param_spec(b3),
                param_spec(w4t), param_spec(b4),
            ],
            out_specs=pl.BlockSpec((1, tile), lambda i: (0, i)),
        ),
        compiler_params=pltpu.CompilerParams(
            dimension_semantics=("parallel",),
            vmem_limit_bytes=vmem_bytes),
    )(xr, tr, w1x, w1t, b1, w2k, b2, w3k, b3, w4t, b4)

    return out_row[0, :n].reshape(n, 1)


def init_params(key, layers=LAYERS):
    """PyTorch-layout init matching nn.Linear defaults: W ~ U(-1/sqrt(in), ...),
    W: (out, in), b: (out, 1)."""
    params = []
    for i in range(len(layers) - 1):
        fan_in, fan_out = layers[i], layers[i + 1]
        key, kw, kb = jax.random.split(key, 3)
        bound = 1.0 / jnp.sqrt(jnp.float32(fan_in))
        w = jax.random.uniform(kw, (fan_out, fan_in), jnp.float32, -bound, bound)
        b = jax.random.uniform(kb, (fan_out, 1), jnp.float32, -bound, bound)
        params.append((w, b))
    return params


def pinn_forward_ref(x, t, params):
    """Pure-JAX reference mirroring the PyTorch forward exactly."""
    h = jnp.concatenate([x, t], axis=1)            # (N, 2)
    n_layers = len(params)
    for i, (w, b) in enumerate(params):
        h = h @ w.T + b.reshape(1, -1)             # nn.Linear: x @ W.T + b
        if i < n_layers - 1:
            h = jnp.tanh(h)
    return h


if __name__ == "__main__":
    key = jax.random.PRNGKey(0)
    kp, kx, kt = jax.random.split(key, 3)

    params = init_params(kp)

    # Deterministic inputs: N collocation points, x in [0,1], t in [0,T].
    N = 2048
    x = jax.random.uniform(kx, (N, 1), jnp.float32, 0.0, 1.0)
    t = jax.random.uniform(kt, (N, 1), jnp.float32, 0.0, T_FINAL)
    ref = pinn_forward_ref(x, t, params)

    # Full-f32 path: tight match to the PyTorch-equivalent reference.
    out_f32 = jax.block_until_ready(pinn_forward(x, t, params, mxu_bf16=False))
    assert out_f32.shape == (N, 1) and out_f32.dtype == jnp.float32
    assert jnp.allclose(out_f32, ref, atol=2e-5, rtol=2e-5), \
        "Pallas f32 output mismatch vs reference"

    # Default (fast) path: bf16 MXU operands, f32 accumulation / activations.
    out_fast = jax.block_until_ready(pinn_forward(x, t, params))
    assert out_fast.shape == (N, 1) and out_fast.dtype == jnp.float32
    assert jnp.allclose(out_fast, ref, atol=3e-2, rtol=3e-2), \
        "Pallas bf16-MXU output mismatch vs reference"

    # Ragged N (not a multiple of 128): exercises the low-waste padding path.
    N2 = 1000
    x2, t2 = x[:N2], t[:N2]
    out2 = jax.block_until_ready(pinn_forward(x2, t2, params))
    ref2 = pinn_forward_ref(x2, t2, params)
    assert out2.shape == (N2, 1)
    assert jnp.allclose(out2, ref2, atol=3e-2, rtol=3e-2), \
        "Pallas ragged-N output mismatch vs reference"

    print("KERNEL_OK")
</pallas_src>

<mosaic_0001>
module attributes {stable_mosaic.version = 11 : i64} {
  func.func @_pinn_kernel(%arg0: i32, %arg1: memref<1x1024xf32, #tpu.memory_space<vmem>>, %arg2: memref<1x1024xf32, #tpu.memory_space<vmem>>, %arg3: memref<64x1xf32, #tpu.memory_space<vmem>>, %arg4: memref<64x1xf32, #tpu.memory_space<vmem>>, %arg5: memref<64x1xf32, #tpu.memory_space<vmem>>, %arg6: memref<64x64xf32, #tpu.memory_space<vmem>>, %arg7: memref<64x1xf32, #tpu.memory_space<vmem>>, %arg8: memref<64x64xf32, #tpu.memory_space<vmem>>, %arg9: memref<64x1xf32, #tpu.memory_space<vmem>>, %arg10: memref<64x1xf32, #tpu.memory_space<vmem>>, %arg11: memref<1x1xf32, #tpu.memory_space<vmem>>, %arg12: memref<1x1024xf32, #tpu.memory_space<vmem>>) attributes {dimension_semantics = [#tpu.dimension_semantics<parallel>], iteration_bounds = array<i64: 2>, scalar_prefetch = 0 : i64, scratch_operands = 0 : i64, tpu.core_type = #tpu.core_type<tc>, window_params = [{transform_indices = @transform_0, window_bounds = array<i64: 1, 1024>}, {transform_indices = @transform_1, window_bounds = array<i64: 1, 1024>}, {pipeline_mode = #tpu.pipeline_mode<synchronous>, transform_indices = @transform_2, window_bounds = array<i64: 64, 1>}, {pipeline_mode = #tpu.pipeline_mode<synchronous>, transform_indices = @transform_3, window_bounds = array<i64: 64, 1>}, {pipeline_mode = #tpu.pipeline_mode<synchronous>, transform_indices = @transform_4, window_bounds = array<i64: 64, 1>}, {pipeline_mode = #tpu.pipeline_mode<synchronous>, transform_indices = @transform_5, window_bounds = array<i64: 64, 64>}, {pipeline_mode = #tpu.pipeline_mode<synchronous>, transform_indices = @transform_6, window_bounds = array<i64: 64, 1>}, {pipeline_mode = #tpu.pipeline_mode<synchronous>, transform_indices = @transform_7, window_bounds = array<i64: 64, 64>}, {pipeline_mode = #tpu.pipeline_mode<synchronous>, transform_indices = @transform_8, window_bounds = array<i64: 64, 1>}, {pipeline_mode = #tpu.pipeline_mode<synchronous>, transform_indices = @transform_9, window_bounds = array<i64: 64, 1>}, {pipeline_mode = #tpu.pipeline_mode<synchronous>, transform_indices = @transform_10, window_bounds = array<i64: 1, 1>}, {transform_indices = @transform_11, window_bounds = array<i64: 1, 1024>}]} {
    %c0 = arith.constant 0 : index
    %c0_0 = arith.constant 0 : index
    %0 = vector.load %arg1[%c0, %c0_0] : memref<1x1024xf32, #tpu.memory_space<vmem>>, vector<1x1024xf32>
    %c0_1 = arith.constant 0 : index
    %c0_2 = arith.constant 0 : index
    %1 = vector.load %arg2[%c0_1, %c0_2] : memref<1x1024xf32, #tpu.memory_space<vmem>>, vector<1x1024xf32>
    %c0_3 = arith.constant 0 : index
    %c0_4 = arith.constant 0 : index
    %2 = vector.load %arg3[%c0_3, %c0_4] : memref<64x1xf32, #tpu.memory_space<vmem>>, vector<64x1xf32>
    %3 = vector.broadcast %2 : vector<64x1xf32> to vector<64x1024xf32>
    %4 = vector.broadcast %0 : vector<1x1024xf32> to vector<64x1024xf32>
    %5 = arith.mulf %3, %4 : vector<64x1024xf32>
    %c0_5 = arith.constant 0 : index
    %c0_6 = arith.constant 0 : index
    %6 = vector.load %arg4[%c0_5, %c0_6] : memref<64x1xf32, #tpu.memory_space<vmem>>, vector<64x1xf32>
    %7 = vector.broadcast %6 : vector<64x1xf32> to vector<64x1024xf32>
    %8 = vector.broadcast %1 : vector<1x1024xf32> to vector<64x1024xf32>
    %9 = arith.mulf %7, %8 : vector<64x1024xf32>
    %10 = arith.addf %5, %9 : vector<64x1024xf32>
    %c0_7 = arith.constant 0 : index
    %c0_8 = arith.constant 0 : index
    %11 = vector.load %arg5[%c0_7, %c0_8] : memref<64x1xf32, #tpu.memory_space<vmem>>, vector<64x1xf32>
    %12 = vector.broadcast %11 : vector<64x1xf32> to vector<64x1024xf32>
    %13 = arith.addf %10, %12 : vector<64x1024xf32>
    %14 = math.tanh %13 : vector<64x1024xf32>
    %c0_9 = arith.constant 0 : index
    %c0_10 = arith.constant 0 : index
    %15 = vector.load %arg6[%c0_9, %c0_10] : memref<64x64xf32, #tpu.memory_space<vmem>>, vector<64x64xf32>
    %cst = arith.constant dense<0.000000e+00> : vector<64x1024xf32>
    %16 = tpu.matmul %15, %14, %cst {dimension_numbers = #tpu.dot_dimension_numbers<[1], [0], [0], [1], [0, 0, 1, 1], [], []>} : vector<64x64xf32>, vector<64x1024xf32>, vector<64x1024xf32> -> vector<64x1024xf32>
    %c0_11 = arith.constant 0 : index
    %c0_12 = arith.constant 0 : index
    %17 = vector.load %arg7[%c0_11, %c0_12] : memref<64x1xf32, #tpu.memory_space<vmem>>, vector<64x1xf32>
    %18 = vector.broadcast %17 : vector<64x1xf32> to vector<64x1024xf32>
    %19 = arith.addf %16, %18 : vector<64x1024xf32>
    %20 = math.tanh %19 : vector<64x1024xf32>
    %c0_13 = arith.constant 0 : index
    %c0_14 = arith.constant 0 : index
    %21 = vector.load %arg8[%c0_13, %c0_14] : memref<64x64xf32, #tpu.memory_space<vmem>>, vector<64x64xf32>
    %cst_15 = arith.constant dense<0.000000e+00> : vector<64x1024xf32>
    %22 = tpu.matmul %21, %20, %cst_15 {dimension_numbers = #tpu.dot_dimension_numbers<[1], [0], [0], [1], [0, 0, 1, 1], [], []>} : vector<64x64xf32>, vector<64x1024xf32>, vector<64x1024xf32> -> vector<64x1024xf32>
    %c0_16 = arith.constant 0 : index
    %c0_17 = arith.constant 0 : index
    %23 = vector.load %arg9[%c0_16, %c0_17] : memref<64x1xf32, #tpu.memory_space<vmem>>, vector<64x1xf32>
    %24 = vector.broadcast %23 : vector<64x1xf32> to vector<64x1024xf32>
    %25 = arith.addf %22, %24 : vector<64x1024xf32>
    %26 = math.tanh %25 : vector<64x1024xf32>
    %c0_18 = arith.constant 0 : index
    %c0_19 = arith.constant 0 : index
    %27 = vector.load %arg10[%c0_18, %c0_19] : memref<64x1xf32, #tpu.memory_space<vmem>>, vector<64x1xf32>
    %28 = vector.broadcast %27 : vector<64x1xf32> to vector<64x1024xf32>
    %29 = arith.mulf %28, %26 : vector<64x1024xf32>
    %cst_20 = arith.constant dense<0.000000e+00> : vector<1024xf32>
    %30 = vector.multi_reduction <add>, %29, %cst_20 [0] : vector<64x1024xf32> to vector<1024xf32>
    %31 = vector.shape_cast %30 : vector<1024xf32> to vector<1x1024xf32>
    %c0_21 = arith.constant 0 : index
    %c0_22 = arith.constant 0 : index
    %32 = vector.load %arg11[%c0_21, %c0_22] : memref<1x1xf32, #tpu.memory_space<vmem>>, vector<1x1xf32>
    %33 = vector.broadcast %32 : vector<1x1xf32> to vector<1x1024xf32>
    %34 = arith.addf %31, %33 : vector<1x1024xf32>
    %c0_23 = arith.constant 0 : index
    %c0_24 = arith.constant 0 : index
    %35 = vector.load %arg12[%c0_23, %c0_24] : memref<1x1024xf32, #tpu.memory_space<vmem>>, vector<1x1024xf32>
    tpu.vector_store %arg12[%c0_23, %c0_24], %34 {strides = array<i32>} : memref<1x1024xf32, #tpu.memory_space<vmem>>, vector<1x1024xf32>,
    return
  }
  func.func @transform_0(%arg0: i32) -> (i32, i32) {
    %c0_i32 = arith.constant 0 : i32
    %c0_i32_0 = arith.constant 0 : i32
    return %c0_i32, %arg0 : i32, i32
  }
  func.func @transform_1(%arg0: i32) -> (i32, i32) {
    %c0_i32 = arith.constant 0 : i32
    %c0_i32_0 = arith.constant 0 : i32
    return %c0_i32, %arg0 : i32, i32
  }
  func.func @transform_2(%arg0: i32) -> (i32, i32) {
    %c0_i32 = arith.constant 0 : i32
    %c0_i32_0 = arith.constant 0 : i32
    %c0_i32_1 = arith.constant 0 : i32
    return %c0_i32, %c0_i32_0 : i32, i32
  }
  func.func @transform_3(%arg0: i32) -> (i32, i32) {
    %c0_i32 = arith.constant 0 : i32
    %c0_i32_0 = arith.constant 0 : i32
    %c0_i32_1 = arith.constant 0 : i32
    return %c0_i32, %c0_i32_0 : i32, i32
  }
  func.func @transform_4(%arg0: i32) -> (i32, i32) {
    %c0_i32 = arith.constant 0 : i32
    %c0_i32_0 = arith.constant 0 : i32
    %c0_i32_1 = arith.constant 0 : i32
    return %c0_i32, %c0_i32_0 : i32, i32
  }
  func.func @transform_5(%arg0: i32) -> (i32, i32) {
    %c0_i32 = arith.constant 0 : i32
    %c0_i32_0 = arith.constant 0 : i32
    %c0_i32_1 = arith.constant 0 : i32
    return %c0_i32, %c0_i32_0 : i32, i32
  }
  func.func @transform_6(%arg0: i32) -> (i32, i32) {
    %c0_i32 = arith.constant 0 : i32
    %c0_i32_0 = arith.constant 0 : i32
    %c0_i32_1 = arith.constant 0 : i32
    return %c0_i32, %c0_i32_0 : i32, i32
  }
  func.func @transform_7(%arg0: i32) -> (i32, i32) {
    %c0_i32 = arith.constant 0 : i32
    %c0_i32_0 = arith.constant 0 : i32
    %c0_i32_1 = arith.constant 0 : i32
    return %c0_i32, %c0_i32_0 : i32, i32
  }
  func.func @transform_8(%arg0: i32) -> (i32, i32) {
    %c0_i32 = arith.constant 0 : i32
    %c0_i32_0 = arith.constant 0 : i32
    %c0_i32_1 = arith.constant 0 : i32
    return %c0_i32, %c0_i32_0 : i32, i32
  }
  func.func @transform_9(%arg0: i32) -> (i32, i32) {
    %c0_i32 = arith.constant 0 : i32
    %c0_i32_0 = arith.constant 0 : i32
    %c0_i32_1 = arith.constant 0 : i32
    return %c0_i32, %c0_i32_0 : i32, i32
  }
  func.func @transform_10(%arg0: i32) -> (i32, i32) {
    %c0_i32 = arith.constant 0 : i32
    %c0_i32_0 = arith.constant 0 : i32
    %c0_i32_1 = arith.constant 0 : i32
    return %c0_i32, %c0_i32_0 : i32, i32
  }
  func.func @transform_11(%arg0: i32) -> (i32, i32) {
    %c0_i32 = arith.constant 0 : i32
    %c0_i32_0 = arith.constant 0 : i32
    return %c0_i32, %arg0 : i32, i32
  }
}

</mosaic_0001>

<bundles_post_ra>
// kernel: pinn_forward.1
= control target key start
LH: loop header
LB: loop body
LE: loop exit
PB: predicated region body
PF: predicated region fallthrough
CT: control target
= control target key end

     0   :  { %s4330_s0 = inlined_call_operand.vmem [shape: f32[1,2048], index: 0, kind: input, shape index: {}]   ;;  %s4331_s1 = inlined_call_operand.vmem [shape: f32[1,2048], index: 1, kind: input, shape index: {}]   ;;  %s4332_s2 = inlined_call_operand.vmem [shape: f32[64,1], index: 2, kind: input, shape index: {}]   ;;  %s4333_s3 = inlined_call_operand.vmem [shape: f32[64,1], index: 3, kind: input, shape index: {}]   ;;  %s4334_s4 = inlined_call_operand.vmem [shape: f32[64,1], index: 4, kind: input, shape index: {}]   ;;  %s4335_s5 = inlined_call_operand.vmem [shape: f32[64,64], index: 5, kind: input, shape index: {}]   ;;  %s4336_s6 = inlined_call_operand.vmem [shape: f32[64,1], index: 6, kind: input, shape index: {}]   ;;  %s4337_s7 = inlined_call_operand.vmem [shape: f32[64,64], index: 7, kind: input, shape index: {}]   ;;  %s4338_s8 = inlined_call_operand.vmem [shape: f32[64,1], index: 8, kind: input, shape index: {}]   ;;  %s4339_s9 = inlined_call_operand.vmem [shape: f32[64,1], index: 9, kind: input, shape index: {}]   ;;  %s4340_s10 = inlined_call_operand.<no memory space> [shape: f32[1,1], index: 10, kind: input, shape index: {}]   ;;  %s4341_s11 = inlined_call_operand.hbm [shape: f32[1,2048], index: 11, kind: output, shape index: {}]  }
   0x1   :  { %4354 = sst [smem:[#allocation15_spill]] %s4332_s2  ;;  %v16_v0 = vstv %s4340_s10 }
   0x2   :  { %4355 = sst [smem:[#allocation16_spill]] %s4333_s3  ;;  %17 = vst [vmem:[#allocation2] sm:$0x1] %v16_v0 }
   0x3   :  { %18 = vsyncpa [#allocation4], 0 }
   0x4   :  { %20 = vsyncpa [#allocation4 + $0x1], 0  ;;  %s2888_s19 = smov 0   ;;  %s2890_s20 = smov 0  }
   0x5   :  { %s2892_s21 = smov 0   ;;  %s2894_s22 = smov 0  }
   0x6 LB: > { %s2193_s10 = sadd.s32 4294967295, %s2822_s22   ;;  %s2194_s23 = sadd.s32 4294967294, %s2822_s22   ;;  %s2822_s22 = sphi %s2894_s22, %s4381_s22   ;;  %s2818_s21 = sphi %s2892_s21, %s4380_s21   ;;  %s2814_s20 = sphi %s2890_s20, %s4379_s20   ;;  %s2810_s19 = sphi %s2888_s19, %s4378_s19  }
   0x7   : > { %s2911_s24 = sadd.s32 1, %s2822_s22   ;;  %s274_s25 = sadd.s32 1, %s2818_s21 }
   0x8   : > { %s271_s26 = ssub.s32 %s2822_s22, %s2911_s24  ;;  %p284_p0 = scmp.ne.s32.totalorder %s2818_s21, %s2814_s20 }
   0x9   : > { %p272_p1 = scmp.eq.s32.totalorder %s271_s26, 0  ;;  %p285_p2 = scmp.eq.s32.totalorder %s2193_s10, 1 }
   0xa   : > { %p290_p3 = scmp.ne.s32.totalorder %s2814_s20, %s2810_s19  ;;  %p291_p4 = scmp.eq.s32.totalorder %s2194_s23, 1 }
   0xb   : > { %s2923_s27 = scalar_select %p272_p1, %s2818_s21, %s274_s25  }
   0xc   : > { %p2925_p5 = por %p285_p2, %p284_p0  ;;  %p2929_p6 = por %p291_p4, %p290_p3 }
   0xd   : > { %p2197_p7 = scmp.ge.s32.totalorder %s2822_s22, 1  ;;  %p352_p8 = scmp.lt.s32.totalorder %s2822_s22, 3 }
   0xf   : > { %p353_p9 = pnand %p2197_p7, %p352_p8 }
  0x11   : > { %356 = sbr.rel (%p353_p9) target bundleno = 723 (0x2d3), region = 64 }
  0x16   : > { %s4358_s2 = sld [smem:[#allocation15_spill]]  ;;  %v2824_v4 = vmov 0   ;;  %v737_v9 = vld [vmem:[%s4334_s4 + $0x38] sm:$0xff]  ;;  %v736_v12 = vld [vmem:[%s4334_s4 + $0x30] sm:$0xff]  ;;  %v735_v15 = vld [vmem:[%s4334_s4 + $0x28] sm:$0xff]  ;;  %s3067_s18 = sshll.u32 %s2193_s10, 3 }
  0x17   : > { %2375 = vset.pattern.permute.xlu2 %v2824_v4  ;;  %2374 = vset.pattern.permute.xlu1 %v2824_v4  ;;  %s4359_s3 = sld [smem:[#allocation16_spill]]  ;;  %v734_v18 = vld [vmem:[%s4334_s4 + $0x20] sm:$0xff]  ;;  %v733_v21 = vld [vmem:[%s4334_s4 + $0x18] sm:$0xff]  ;;  %v731_v23 = vld [vmem:[%s4334_s4 + $0x8] sm:$0xff]  ;;  %p396_p10 = scmp.lt.s32.totalorder %s3067_s18, 15  ;;  %vm962_vm0 = vcmask 523264  }
  0x18   : > { %2373 = vset.pattern.permute.xlu0 %v2824_v4  ;;  %v732_v24 = vld [vmem:[%s4334_s4 + $0x10] sm:$0xff]  ;;  %v730_v25 = vld [vmem:[%s4334_s4] sm:$0xff]  ;;  %v921_v27 = vld [vmem:[%s4336_s6 + $0x38] sm:$0xff]  ;;  %vm2097_vm1 = vcmask 1040384   ;;  %vm2099_vm2 = vcmask 1042434   ;;  %vm2101_vm3 = vcmask 1041408   ;;  %s2124_s30 = scalar_lea.hbm %s4341_s11, %s3067_s18 }
  0x19   : > { %v920_v26 = vld [vmem:[%s4336_s6 + $0x30] sm:$0xff]  ;;  %v919_v28 = vld [vmem:[%s4336_s6 + $0x28] sm:$0xff]  ;;  %v917_v29 = vld [vmem:[%s4336_s6 + $0x18] sm:$0xff]  ;;  %s397_s14 = scalar_select %p396_p10, %s3067_s18, 15  ;;  %vm2103_vm4 = vcmask 1044484   ;;  %vm2105_vm5 = vcmask 1046534  }
  0x1a   : > { %v918_v30 = vld [vmem:[%s4336_s6 + $0x20] sm:$0xff]  ;;  %v916_v31 = vld [vmem:[%s4336_s6 + $0x10] sm:$0xff]  ;;  %v915_v33 = vld [vmem:[%s4336_s6 + $0x8] sm:$0xff]  ;;  %s392_s17 = sand.u32 1, %s2814_s20   ;;  %vm2107_vm6 = vcmask 1045508   ;;  %vm2109_vm7 = vcmask 1043456  }
  0x1b   : > { %v914_v32 = vld [vmem:[%s4336_s6] sm:$0xff]  ;;  %v1389_v35 = vld [vmem:[%s4338_s8 + $0x10] sm:$0xff]  ;;  %v1388_v36 = vld [vmem:[%s4338_s8 + $0x8] sm:$0xff]  ;;  %s403_s16 = scalar_lea.vmem %s4331_s1, %s397_s14  ;;  %s398_s25 = scalar_lea.vmem %s4330_s0, %s397_s14 }
  0x1c   : > { %v415_v1 = vld [vmem:[%s4358_s2 + $0x38] sm:$0xff]  ;;  %v414_v2 = vld [vmem:[%s4358_s2 + $0x30] sm:$0xff]  ;;  %v413_v3 = vld [vmem:[%s4358_s2 + $0x28] sm:$0xff]  ;;  %s2198_s23 = sshll.u32 %s392_s17, 3  ;;  %s2114_s18 = scalar_lea.sflag [#allocation4], %s392_s17 }
  0x1d   : > { %448 = vperm.xlu1 %2374, %v414_v2   ;;  %453 = vperm.xlu0 %2373, %v415_v1   ;;  %v543_v5 = vld [vmem:[%s4359_s3 + $0x30] sm:$0xff]  ;;  %v544_v6 = vld [vmem:[%s4359_s3 + $0x38] sm:$0xff]  ;;  %v542_v7 = vld [vmem:[%s4359_s3 + $0x28] sm:$0xff]  ;;  %s394_s12 = scalar_lea.vmem [#allocation3], %s2198_s23 }
  0x1e   : > { %443 = vperm.xlu2 %2375, %v413_v3   ;;  %v412_v8 = vld [vmem:[%s4358_s2 + $0x20] sm:$0xff]  ;;  %v411_v11 = vld [vmem:[%s4358_s2 + $0x18] sm:$0xff]  ;;  %v410_v14 = vld [vmem:[%s4358_s2 + $0x10] sm:$0xff]  ;;  %s2126_s13 = sshll.u32 %s394_s12, 4  ;;  %s2127_s13 = int_to_ptr.vmem [resolvable:$true] %s2126_s13 }
  0x1f   : > { %v541_v10 = vld [vmem:[%s4359_s3 + $0x20] sm:$0xff]  ;;  %v540_v13 = vld [vmem:[%s4359_s3 + $0x18] sm:$0xff]  ;;  %v539_v16 = vld [vmem:[%s4359_s3 + $0x10] sm:$0xff] }
  0x20   : > { %v409_v17 = vld [vmem:[%s4358_s2 + $0x8] sm:$0xff]  ;;  %v408_v20 = vld [vmem:[%s4358_s2] sm:$0xff]  ;;  %v1390_v37 = vld [vmem:[%s4338_s8 + $0x18] sm:$0xff]  ;;  %s2128_s2 = sshll.u32 %s2124_s30, 4  ;;  %s2129_s2 = int_to_ptr.hbm [resolvable:$true] %s2128_s2 }
  0x21   : > { %v538_v19 = vld [vmem:[%s4359_s3 + $0x8] sm:$0xff]  ;;  %v537_v22 = vld [vmem:[%s4359_s3] sm:$0xff]  ;;  %v1393_v42 = vld [vmem:[%s4338_s8 + $0x30] sm:$0xff]  ;;  %s2774_s3 = sshra.s32 %s2129_s2, 4  ;;  %s2775_s3 = int_to_ptr.hbm [resolvable:$true] %s2774_s3 }
  0x22   : > { %v1387_v34 = vld [vmem:[%s4338_s8] sm:$0xff]  ;;  %v1392_v38 = vld [vmem:[%s4338_s8 + $0x28] sm:$0xff]  ;;  %v1853_v44 = vld [vmem:[%s4339_s9 + $0x10] sm:$0xff]  ;;  %s2776_s14 = scalar_lea.hbm %s2775_s3, 8  ;;  %p2781_p0 = scmp.lt.s32.totalorder %s2775_s3, %s4341_s11 }
  0x23   : > { %v1391_v40 = vld [vmem:[%s4338_s8 + $0x20] sm:$0xff]  ;;  %v1852_v43 = vld [vmem:[%s4339_s9 + $0x8] sm:$0xff]  ;;  %v1854_v46 = vld [vmem:[%s4339_s9 + $0x18] sm:$0xff]  ;;  %p2777_p11 = scmp.ne.s32.totalorder %s2775_s3, %s2776_s14 }
  0x24   : > { %v1851_v41 = vld [vmem:[%s4339_s9] sm:$0xff]  ;;  %v1394_v47 = vld [vmem:[%s4338_s8 + $0x38] sm:$0xff]  ;;  %v1857_v52 = vld [vmem:[%s4339_s9 + $0x30] sm:$0xff] }
  0x25   : > { %577 = vperm.xlu1 %2374, %v543_v5   ;;  %582 = vperm.xlu0 %2373, %v544_v6   ;;  %v1855_v48 = vld [vmem:[%s4339_s9 + $0x20] sm:$0xff]  ;;  %v1856_v53 = vld [vmem:[%s4339_s9 + $0x28] sm:$0xff]  ;;  %v1858_v54 = vld [vmem:[%s4339_s9 + $0x38] sm:$0xff]  ;;  %p2778_p12 = pnand %p2777_p11, %p2925_p5 }
  0x26   : > { %572 = vperm.xlu2 %2375, %v542_v7   ;;  %v407_v55 = vld [vmem:[%s403_s16] sm:$0xff]  ;;  %s2780_s16 = scalar_lea.hbm %s4341_s11, 16 }
  0x27   : > { %v406_v56 = vld [vmem:[%s398_s25] sm:$0xff]  ;;  %v3101_v57 = vperm.slane %v407_v55, 0  ;;  %v3109_v61 = vperm.slane %v407_v55, 1  ;;  %v3115_v0 = vperm.slane %v407_v55, 2  ;;  %v3119_v2 = vperm.slane %v407_v55, 3  ;;  %p2779_p13 = pneg %p2778_p12  ;;  %p2782_p1 = scmp.lt.s32.totalorder %s2780_s16, %s2776_s14 }
  0x28   : > { %v3105_v59 = vperm.slane %v406_v56, 0  ;;  %v3107_v60 = vperm.slane %v406_v56, 1  ;;  %v3111_v62 = vperm.slane %v406_v56, 2  ;;  %v3117_v1 = vperm.slane %v406_v56, 3 }
  0x29   : > { %p2783_p2 = por %p2782_p1, %p2781_p0 }
  0x2b   : > { %p2784_p3 = pnand %p2783_p2, %p2779_p13 }
  0x2d   : > { %438 = vperm.xlu1 %2374, %v412_v8   ;;  %775 = vperm.xlu0 %2373, %v737_v9   ;;  %v3133_v9 = vperm.slane %v406_v56, 4 }
  0x2e   : > { %567 = vperm.xlu2 %2375, %v541_v10   ;;  %v3135_v10 = vperm.slane %v406_v56, 5 }
  0x35   : > { %433 = vperm.xlu1 %2374, %v411_v11   ;;  %770 = vperm.xlu0 %2373, %v736_v12   ;;  %v2067_v11 = vld [vmem:[#allocation2] sm:$0x1] }
  0x36   : > { %562 = vperm.xlu2 %2375, %v540_v13  }
  0x3d   : > { %428 = vperm.xlu1 %2374, %v410_v14   ;;  %765 = vperm.xlu0 %2373, %v735_v15  }
  0x3e   : > { %557 = vperm.xlu2 %2375, %v539_v16  }
  0x45   : > { %423 = vperm.xlu1 %2374, %v409_v17   ;;  %760 = vperm.xlu0 %2373, %v734_v18  }
  0x46   : > { %552 = vperm.xlu2 %2375, %v538_v19   ;;  %v3151_v19 = vperm.slane %v406_v56, 6 }
  0x4d   : > { %418 = vperm.xlu1 %2374, %v408_v20   ;;  %755 = vperm.xlu0 %2373, %v733_v21  }
  0x4e   : > { %547 = vperm.xlu2 %2375, %v537_v22  }
  0x55   : > { %745 = vperm.xlu1 %2374, %v731_v23   ;;  %750 = vperm.xlu0 %2373, %v732_v24   ;;  %v3159_v23 = vperm.slane %v407_v55, 4 }
  0x56   : > { %740 = vperm.xlu2 %2375, %v730_v25  }
  0x5d   : > { %954 = vperm.xlu1 %2374, %v920_v26   ;;  %959 = vperm.xlu0 %2373, %v921_v27   ;;  %v3165_v26 = vperm.slane %v407_v55, 5  ;;  %v3167_v27 = vperm.slane %v407_v55, 6 }
  0x5e   : > { %949 = vperm.xlu2 %2375, %v919_v28  }
  0x65   : > { %939 = vperm.xlu1 %2374, %v917_v29   ;;  %944 = vperm.xlu0 %2373, %v918_v30  }
  0x66   : > { %934 = vperm.xlu2 %2375, %v916_v31  }
  0x6d   : > { %924 = vperm.xlu1 %2374, %v914_v32   ;;  %929 = vperm.xlu0 %2373, %v915_v33  }
  0x6e   : > { %1397 = vperm.xlu2 %2375, %v1387_v34  }
  0x75   : > { %1407 = vperm.xlu1 %2374, %v1389_v35   ;;  %1402 = vperm.xlu0 %2373, %v1388_v36  }
  0x76   : > { %1412 = vperm.xlu2 %2375, %v1390_v37   ;;  %v3179_v37 = vperm.slane %v406_v56, 7 }
  0x78   : > { %v3046_v39 = vpop.permute.xlu2 %443 }
  0x79   : > { %v513_v4 = vmul.f32 %v3105_v59, %v3046_v39  ;;  %v514_v5 = vmul.f32 %v3107_v60, %v3046_v39  ;;  %v515_v6 = vmul.f32 %v3111_v62, %v3046_v39  ;;  %v516_v8 = vmul.f32 %v3117_v1, %v3046_v39 }
  0x7d   : > { %1422 = vperm.xlu1 %2374, %v1392_v38   ;;  %1417 = vperm.xlu0 %2373, %v1391_v40  }
  0x7e   : > { %1861 = vperm.xlu2 %2375, %v1851_v41  }
  0x80   : > { %v3063_v45 = vpop.permute.xlu2 %572 }
  0x81   : > { %v642_v7 = vmul.f32 %v3101_v57, %v3063_v45  ;;  %v643_v15 = vmul.f32 %v3109_v61, %v3063_v45  ;;  %v644_v17 = vmul.f32 %v3115_v0, %v3063_v45  ;;  %v645_v18 = vmul.f32 %v3119_v2, %v3063_v45 }
  0x83   : > { %v3163_v25 = vadd.f32 %v642_v7, %v513_v4  ;;  %v3171_v32 = vadd.f32 %v643_v15, %v514_v5  ;;  %v3175_v35 = vadd.f32 %v644_v17, %v515_v6  ;;  %v3177_v36 = vadd.f32 %v645_v18, %v516_v8 }
  0x85   : > { %1427 = vperm.xlu1 %2374, %v1393_v42   ;;  %1866 = vperm.xlu0 %2373, %v1852_v43   ;;  %v3184_v42 = vperm.slane %v407_v55, 7 }
  0x86   : > { %1871 = vperm.xlu2 %2375, %v1853_v44  }
  0x88   : > { %v3080_v49 = vpop.permute.xlu2 %567 }
  0x89   : > { %4360 = vst [vmem:[#allocation6_spill] sm:$0xff] %v3080_v49  ;;  %v3189_v44 = vmul.f32 %v3101_v57, %v3080_v49  ;;  %v3213_v4 = vmul.f32 %v3119_v2, %v3080_v49 }
  0x8d   : > { %1876 = vperm.xlu1 %2374, %v1854_v46   ;;  %1432 = vperm.xlu0 %2373, %v1394_v47   ;;  %v3193_v46 = vmul.f32 %v3109_v61, %v3080_v49  ;;  %v3197_v47 = vmul.f32 %v3115_v0, %v3080_v49 }
  0x8e   : > { %1881 = vperm.xlu2 %2375, %v1855_v48  }
  0x8f   : > { %v3082_v50 = vpop.permute.xlu1 %448  ;;  %v3084_v51 = vpop.permute.xlu0 %453 }
  0x90   : > { %v3121_v3 = vpop.permute.xlu2 %562  ;;  %v529_v20 = vmul.f32 %v3105_v59, %v3084_v51  ;;  %v530_v21 = vmul.f32 %v3107_v60, %v3084_v51  ;;  %v531_v22 = vmul.f32 %v3111_v62, %v3084_v51  ;;  %v532_v24 = vmul.f32 %v3117_v1, %v3084_v51 }
  0x91   : > { %4361 = vst [vmem:[#allocation7_spill] sm:$0xff] %v3121_v3  ;;  %v521_v55 = vmul.f32 %v3105_v59, %v3082_v50  ;;  %v522_v5 = vmul.f32 %v3107_v60, %v3082_v50  ;;  %v523_v6 = vmul.f32 %v3111_v62, %v3082_v50  ;;  %v524_v7 = vmul.f32 %v3117_v1, %v3082_v50 }
  0x92   : > { %v3223_v8 = vmul.f32 %v3101_v57, %v3121_v3  ;;  %v3237_v17 = vmul.f32 %v3119_v2, %v3121_v3 }
  0x95   : > { %1891 = vperm.xlu1 %2374, %v1857_v52   ;;  %1886 = vperm.xlu0 %2373, %v1856_v53  }
  0x96   : > { %1896 = vperm.xlu2 %2375, %v1858_v54  }
  0x97   : > { %v3103_v58 = vpop.permute.xlu1 %577  ;;  %v3113_v63 = vpop.permute.xlu0 %582 }
  0x98   : > { %v658_v12 = vmul.f32 %v3101_v57, %v3113_v63  ;;  %v659_v13 = vmul.f32 %v3109_v61, %v3113_v63  ;;  %v660_v14 = vmul.f32 %v3115_v0, %v3113_v63  ;;  %v661_v16 = vmul.f32 %v3119_v2, %v3113_v63  ;;  %v3199_v48 = vpop.permute.xlu2 %557 }
  0x99   : > { %4363 = vst [vmem:[#allocation9_spill] sm:$0xff] %v3199_v48  ;;  %v650_v52 = vmul.f32 %v3101_v57, %v3103_v58  ;;  %v651_v53 = vmul.f32 %v3109_v61, %v3103_v58  ;;  %v652_v54 = vmul.f32 %v3115_v0, %v3103_v58  ;;  %v653_v56 = vmul.f32 %v3119_v2, %v3103_v58 }
  0x9a   : > { %v722_v29 = vadd.f32 %v658_v12, %v529_v20  ;;  %v723_v30 = vadd.f32 %v659_v13, %v530_v21  ;;  %v724_v31 = vadd.f32 %v660_v14, %v531_v22  ;;  %v725_v34 = vadd.f32 %v661_v16, %v532_v24 }
  0x9b   : > { %v3231_v12 = vmul.f32 %v3115_v0, %v3121_v3  ;;  %v714_v14 = vadd.f32 %v650_v52, %v521_v55  ;;  %v715_v15 = vadd.f32 %v651_v53, %v522_v5  ;;  %v716_v16 = vadd.f32 %v652_v54, %v523_v6 }
  0x9c   : > { %v717_v20 = vadd.f32 %v653_v56, %v524_v7  ;;  %v533_v21 = vmul.f32 %v3133_v9, %v3084_v51  ;;  %v534_v22 = vmul.f32 %v3135_v10, %v3084_v51  ;;  %v535_v24 = vmul.f32 %v3151_v19, %v3084_v51 }
  0x9d   : > { %2070 = vperm.xlu0 %2373, %v2067_v11   ;;  %v3227_v11 = vmul.f32 %v3109_v61, %v3121_v3  ;;  %v662_v52 = vmul.f32 %v3159_v23, %v3113_v63  ;;  %v525_v53 = vmul.f32 %v3133_v9, %v3082_v50  ;;  %v664_v55 = vmul.f32 %v3167_v27, %v3113_v63 }
  0x9e   : > { %v665_v56 = vmul.f32 %v3184_v42, %v3113_v63  ;;  %v3299_v3 = vmul.f32 %v3151_v19, %v3082_v50 }
  0x9f   : > { %v3169_v28 = vpop.permute.xlu1 %438  ;;  %v3173_v33 = vpop.permute.xlu0 %775 }
  0xa0   : > { %4362 = vst [vmem:[#allocation8_spill] sm:$0xff] %v3169_v28  ;;  %v834_v38 = vadd.f32 %v3173_v33, %v722_v29  ;;  %v835_v40 = vadd.f32 %v3173_v33, %v723_v30  ;;  %v836_v41 = vadd.f32 %v3173_v33, %v724_v31  ;;  %v837_v43 = vadd.f32 %v3173_v33, %v725_v34 }
  0xa1   : > { %v505_v6 = vmul.f32 %v3105_v59, %v3169_v28  ;;  %v506_v7 = vmul.f32 %v3107_v60, %v3169_v28 }
  0xa2   : > { %2376 = vtanh.f32 %v834_v38  ;;  %v536_v38 = vmul.f32 %v3179_v37, %v3084_v51  ;;  %v663_v51 = vmul.f32 %v3165_v26, %v3113_v63  ;;  %v3279_v63 = vmul.f32 %v3109_v61, %v3199_v48 }
  0xa3   : > { %2378 = vtanh.f32 %v835_v40  ;;  %v699_v49 = vadd.f32 %v3193_v46, %v506_v7 }
  0xa4   : > { %2380 = vtanh.f32 %v836_v41  ;;  %4365 = vst [vmem:[#allocation11_spill] sm:$0xff] %v3279_v63 }
  0xa5   : > { %2382 = vtanh.f32 %v837_v43  ;;  %v3255_v43 = vmul.f32 %v3101_v57, %v3199_v48 }
  0xa7   : > { %v3233_v13 = vpop.permute.xlu1 %433  ;;  %v3239_v18 = vpop.permute.xlu0 %770 }
  0xa8   : > { %v2377_v29 = vpop.eup %2376  ;;  %v826_v30 = vadd.f32 %v3239_v18, %v714_v14  ;;  %v827_v31 = vadd.f32 %v3239_v18, %v715_v15  ;;  %v828_v34 = vadd.f32 %v3239_v18, %v716_v16  ;;  %v829_v41 = vadd.f32 %v3239_v18, %v717_v20  ;;  %v3273_v15 = vpop.permute.xlu2 %552 }
  0xa9   : > { %v2379_v40 = vpop.eup %2378  ;;  %995 = vmatpush.msra.mxu0 %v2377_v29  ;;  %v507_v14 = vmul.f32 %v3111_v62, %v3169_v28  ;;  %4364 = vst [vmem:[#allocation10_spill] sm:$0xff] %v3273_v15  ;;  %v508_v16 = vmul.f32 %v3117_v1, %v3169_v28  ;;  %v3283_v20 = vmul.f32 %v3115_v0, %v3199_v48 }
  0xaa   : > { %v2381_v54 = vpop.eup %2380  ;;  %1036 = vmatpush.msra.mxu1 %v2379_v40  ;;  %2384 = vtanh.f32 %v826_v30  ;;  %v3287_v29 = vmul.f32 %v3119_v2, %v3199_v48  ;;  %v654_v30 = vmul.f32 %v3159_v23, %v3103_v58  ;;  %v726_v40 = vadd.f32 %v662_v52, %v533_v21 }
  0xab   : > { %v2383_v5 = vpop.eup %2382  ;;  %1077 = vmatpush.msra.mxu2 %v2381_v54  ;;  %2386 = vtanh.f32 %v827_v31  ;;  %4366 = vst [vmem:[#allocation12_spill] sm:$0xff] %v3283_v20  ;;  %v3293_v31 = vmul.f32 %v3135_v10, %v3082_v50  ;;  %v727_v54 = vadd.f32 %v663_v51, %v534_v22  ;;  %v698_v48 = vadd.f32 %v3189_v44, %v505_v6 }
  0xac   : > { %1118 = vmatpush.msra.mxu3 %v2383_v5  ;;  %2388 = vtanh.f32 %v828_v34  ;;  %4367 = vst [vmem:[#allocation13_spill] sm:$0xff] %v3287_v29  ;;  %v728_v5 = vadd.f32 %v664_v55, %v535_v24  ;;  %v700_v28 = vadd.f32 %v3197_v47, %v507_v14  ;;  %v729_v29 = vadd.f32 %v665_v56, %v536_v38 }
  0xad   : > { %2390 = vtanh.f32 %v829_v41  ;;  %v701_v24 = vadd.f32 %v3213_v4, %v508_v16  ;;  %v3317_v46 = vmul.f32 %v3101_v57, %v3273_v15  ;;  %v3329_v47 = vmul.f32 %v3119_v2, %v3273_v15 }
  0xae   : > { %v839_v4 = vadd.f32 %v3173_v33, %v727_v54  ;;  %v497_v51 = vmul.f32 %v3105_v59, %v3233_v13  ;;  %v498_v55 = vmul.f32 %v3107_v60, %v3233_v13  ;;  %v499_v56 = vmul.f32 %v3111_v62, %v3233_v13 }
  0xaf   : > { %v3295_v34 = vpop.permute.xlu1 %428  ;;  %v3301_v41 = vpop.permute.xlu0 %765  ;;  %v500_v6 = vmul.f32 %v3117_v1, %v3233_v13  ;;  %v3342_v7 = vadd.f32 %v3173_v33, %v728_v5  ;;  %v3345_v14 = vadd.f32 %v3173_v33, %v729_v29  ;;  %v718_v16 = vadd.f32 %v654_v30, %v525_v53 }
  0xb0   : > { %v2385_v20 = vpop.eup %2384  ;;  %v818_v63 = vadd.f32 %v3301_v41, %v3163_v25  ;;  %v819_v21 = vadd.f32 %v3301_v41, %v3171_v32  ;;  %v820_v22 = vadd.f32 %v3301_v41, %v3175_v35  ;;  %v821_v44 = vadd.f32 %v3301_v41, %v3177_v36 }
  0xb1   : > { %v2387_v52 = vpop.eup %2386  ;;  %996 = vmatpush.msra.mxu0 %v2385_v20  ;;  %v3321_v25 = vmul.f32 %v3109_v61, %v3273_v15  ;;  %v3325_v32 = vmul.f32 %v3115_v0, %v3273_v15  ;;  %v838_v36 = vadd.f32 %v3173_v33, %v726_v40  ;;  %v656_v20 = vmul.f32 %v3167_v27, %v3103_v58  ;;  %v3351_v40 = vpop.permute.xlu2 %547 }
  0xb2   : > { %v2389_v35 = vpop.eup %2388  ;;  %1037 = vmatpush.msra.mxu1 %v2387_v52  ;;  %2392 = vtanh.f32 %v818_v63  ;;  %v655_v63 = vmul.f32 %v3165_v26, %v3103_v58  ;;  %4368 = vst [vmem:[#allocation14_spill] sm:$0xff] %v3351_v40  ;;  %v528_v5 = vmul.f32 %v3179_v37, %v3082_v50  ;;  %v657_v33 = vmul.f32 %v3184_v42, %v3103_v58 }
  0xb3   : > { %v2391_v38 = vpop.eup %2390  ;;  %1078 = vmatpush.msra.mxu2 %v2389_v35  ;;  %2394 = vtanh.f32 %v819_v21  ;;  %v517_v53 = vmul.f32 %v3133_v9, %v3046_v39  ;;  %v690_v30 = vadd.f32 %v3223_v8, %v497_v51  ;;  %v691_v21 = vadd.f32 %v3227_v11, %v498_v55 }
  0xb4   : > { %1119 = vmatpush.msra.mxu3 %v2391_v38  ;;  %2396 = vtanh.f32 %v820_v22  ;;  %v692_v22 = vadd.f32 %v3231_v12, %v499_v56  ;;  %v646_v52 = vmul.f32 %v3159_v23, %v3063_v45  ;;  %v602_v11 = vmul.f32 %v3101_v57, %v3351_v40 }
  0xb5   : > { %2398 = vtanh.f32 %v821_v44  ;;  %v3377_v12 = vmul.f32 %v3109_v61, %v3351_v40  ;;  %v719_v57 = vadd.f32 %v655_v63, %v3293_v31  ;;  %v489_v61 = vmul.f32 %v3105_v59, %v3295_v34 }
  0xb6   : > { %2400 = vtanh.f32 %v838_v36  ;;  %v693_v36 = vadd.f32 %v3237_v17, %v500_v6  ;;  %v3388_v17 = vadd.f32 %v3239_v18, %v718_v16  ;;  %v720_v51 = vadd.f32 %v656_v20, %v3299_v3 }
  0xb7   : > { %v3353_v54 = vpop.permute.xlu1 %423  ;;  %v3361_v29 = vpop.permute.xlu0 %760  ;;  %v721_v56 = vadd.f32 %v657_v33, %v528_v5  ;;  %v3400_v31 = vadd.f32 %v646_v52, %v517_v53  ;;  %v492_v6 = vmul.f32 %v3117_v1, %v3295_v34  ;;  %v518_v16 = vmul.f32 %v3135_v10, %v3046_v39 }
  0xb8   : > { %v2393_v44 = vpop.eup %2392  ;;  %v810_v50 = vadd.f32 %v3361_v29, %v698_v48  ;;  %v811_v35 = vadd.f32 %v3361_v29, %v699_v49  ;;  %v812_v58 = vadd.f32 %v3361_v29, %v700_v28  ;;  %v813_v8 = vadd.f32 %v3361_v29, %v701_v24 }
  0xb9   : > { %v2395_v38 = vpop.eup %2394  ;;  %997 = vmatpush.msra.mxu0 %v2393_v44  ;;  %v3381_v48 = vmul.f32 %v3115_v0, %v3351_v40  ;;  %v3385_v28 = vmul.f32 %v3119_v2, %v3351_v40  ;;  %v490_v0 = vmul.f32 %v3107_v60, %v3295_v34  ;;  %v491_v2 = vmul.f32 %v3111_v62, %v3295_v34  ;;  %v4369_v44 = vld [vmem:[#allocation11_spill] sm:$0xff] }
  0xba   : > { %v2397_v49 = vpop.eup %2396  ;;  %1038 = vmatpush.msra.mxu1 %v2395_v38  ;;  %2402 = vtanh.f32 %v810_v50  ;;  %v647_v3 = vmul.f32 %v3165_v26, %v3063_v45  ;;  %v519_v20 = vmul.f32 %v3151_v19, %v3046_v39  ;;  %v648_v5 = vmul.f32 %v3167_v27, %v3063_v45 }
  0xbb   : > { %v2399_v24 = vpop.eup %2398  ;;  %1079 = vmatpush.msra.mxu2 %v2397_v49  ;;  %2404 = vtanh.f32 %v811_v35  ;;  %v520_v33 = vmul.f32 %v3179_v37, %v3046_v39  ;;  %v682_v52 = vadd.f32 %v3255_v43, %v489_v61  ;;  %v683_v50 = vadd.f32 %v4369_v44, %v490_v0  ;;  %v4370_v39 = vld [vmem:[#allocation12_spill] sm:$0xff]  ;;  %v4371_v61 = vld [vmem:[#allocation13_spill] sm:$0xff] }
  0xbc   : > { %v3396_v55 = vpop.eup %2400  ;;  %1120 = vmatpush.msra.mxu3 %v2399_v24  ;;  %2406 = vtanh.f32 %v812_v58  ;;  %v684_v24 = vadd.f32 %v4370_v39, %v491_v2  ;;  %v685_v0 = vadd.f32 %v4371_v61, %v492_v6  ;;  %v481_v44 = vmul.f32 %v3105_v59, %v3353_v54 }
  0xbd   : > { %2408 = vtanh.f32 %v813_v8  ;;  %v3452_v6 = vadd.f32 %v3239_v18, %v721_v56  ;;  %v4373_v56 = vld [vmem:[#allocation6_spill] sm:$0xff] }
  0xbe   : > { %2410 = vtanh.f32 %v839_v4  ;;  %v649_v4 = vmul.f32 %v3184_v42, %v3063_v45 }
  0xbf   : > { %v3408_v63 = vpop.permute.xlu1 %418  ;;  %v3416_v53 = vpop.permute.xlu0 %755 }
  0xc0   : > { %v473_v35 = vmul.f32 %v3105_v59, %v3408_v63  ;;  %v2403_v58 = vpop.eup %2402  ;;  %v802_v38 = vadd.f32 %v3416_v53, %v690_v30  ;;  %v803_v8 = vadd.f32 %v3416_v53, %v691_v21  ;;  %v804_v49 = vadd.f32 %v3416_v53, %v692_v22 }
  0xc1   : > { %v2405_v40 = vpop.eup %2404  ;;  %998 = vmatpush.msra.mxu0 %v2403_v58  ;;  %v805_v43 = vadd.f32 %v3416_v53, %v693_v36  ;;  %v3433_v30 = vadd.f32 %v3239_v18, %v719_v57  ;;  %v3435_v21 = vadd.f32 %v647_v3, %v518_v16  ;;  %v3437_v22 = vadd.f32 %v648_v5, %v519_v20  ;;  %v3439_v58 = vpop.permute.xlu2 %740  ;;  %v4372_v16 = vld [vmem:[#allocation8_spill] sm:$0xff] }
  0xc2   : > { %v666_v15 = vadd.f32 %v602_v11, %v473_v35  ;;  %v2407_v45 = vpop.eup %2406  ;;  %1039 = vmatpush.msra.mxu1 %v2405_v40  ;;  %2412 = vtanh.f32 %v802_v38  ;;  %v482_v36 = vmul.f32 %v3107_v60, %v3353_v54  ;;  %v3444_v59 = vadd.f32 %v3239_v18, %v720_v51 }
  0xc3   : > { %v2409_v2 = vpop.eup %2408  ;;  %1080 = vmatpush.msra.mxu2 %v2407_v45  ;;  %2414 = vtanh.f32 %v803_v8  ;;  %v3446_v40 = vadd.f32 %v649_v4, %v520_v33  ;;  %v509_v3 = vmul.f32 %v3133_v9, %v4372_v16  ;;  %v674_v20 = vadd.f32 %v3317_v46, %v481_v44 }
  0xc4   : > { %v3448_v11 = vpop.eup %2410  ;;  %1121 = vmatpush.msra.mxu3 %v2409_v2  ;;  %2416 = vtanh.f32 %v804_v49  ;;  %v778_v57 = vadd.f32 %v3439_v58, %v666_v15  ;;  %v483_v51 = vmul.f32 %v3111_v62, %v3353_v54  ;;  %v474_v5 = vmul.f32 %v3107_v60, %v3408_v63 }
  0xc5   : > { %2418 = vtanh.f32 %v805_v43  ;;  %v484_v15 = vmul.f32 %v3117_v1, %v3353_v54  ;;  %v475_v18 = vmul.f32 %v3111_v62, %v3408_v63  ;;  %v638_v35 = vmul.f32 %v3159_v23, %v4373_v56 }
  0xc6   : > { %2420 = vtanh.f32 %v3342_v7  ;;  %v675_v38 = vadd.f32 %v3321_v25, %v482_v36  ;;  %v476_v60 = vmul.f32 %v3117_v1, %v3408_v63  ;;  %v676_v25 = vadd.f32 %v3325_v32, %v483_v51 }
  0xc7   : > { %v3461_v33 = vpop.permute.xlu1 %745  ;;  %v3470_v46 = vpop.permute.xlu0 %750  ;;  %2422 = vtanh.f32 %v3345_v14  ;;  %v667_v61 = vadd.f32 %v3377_v12, %v474_v5  ;;  %v510_v32 = vmul.f32 %v3135_v10, %v4372_v16  ;;  %v640_v36 = vmul.f32 %v3167_v27, %v4373_v56 }
  0xc8   : > { %v786_v4 = vadd.f32 %v3461_v33, %v674_v20  ;;  %v2413_v8 = vpop.eup %2412  ;;  %v794_v49 = vadd.f32 %v3470_v46, %v682_v52  ;;  %v795_v62 = vadd.f32 %v3470_v46, %v683_v50  ;;  %v796_v7 = vadd.f32 %v3470_v46, %v684_v24 }
  0xc9   : > { %2424 = vtanh.f32 %v778_v57  ;;  %v2415_v39 = vpop.eup %2414  ;;  %999 = vmatpush.msra.mxu0 %v2413_v8  ;;  %v797_v43 = vadd.f32 %v3470_v46, %v685_v0  ;;  %v787_v14 = vadd.f32 %v3461_v33, %v675_v38  ;;  %v677_v52 = vadd.f32 %v3329_v47, %v484_v15 }
  0xca   : > { %2426 = vtanh.f32 %v786_v4  ;;  %v2417_v1 = vpop.eup %2416  ;;  %1040 = vmatpush.msra.mxu1 %v2415_v39  ;;  %v668_v50 = vadd.f32 %v3381_v48, %v475_v18  ;;  %v788_v44 = vadd.f32 %v3461_v33, %v676_v25  ;;  %v669_v0 = vadd.f32 %v3385_v28, %v476_v60 }
  0xcb   : > { %2428 = vtanh.f32 %v794_v49  ;;  %v2419_v24 = vpop.eup %2418  ;;  %1081 = vmatpush.msra.mxu2 %v2417_v1  ;;  %v789_v45 = vadd.f32 %v3461_v33, %v677_v52  ;;  %v639_v47 = vmul.f32 %v3165_v26, %v4373_v56  ;;  %v511_v48 = vmul.f32 %v3151_v19, %v4372_v16 }
  0xcc   : > { %2430 = vtanh.f32 %v795_v62  ;;  %v3490_v12 = vpop.eup %2420  ;;  %1122 = vmatpush.msra.mxu3 %v2419_v24  ;;  %v779_v28 = vadd.f32 %v3439_v58, %v667_v61  ;;  %v512_v57 = vmul.f32 %v3179_v37, %v4372_v16  ;;  %v780_v51 = vadd.f32 %v3439_v58, %v668_v50 }
  0xcd   : > { %2432 = vtanh.f32 %v796_v7  ;;  %v3497_v2 = vpop.eup %2422  ;;  %v702_v5 = vadd.f32 %v638_v35, %v509_v3  ;;  %v641_v15 = vmul.f32 %v3184_v42, %v4373_v56  ;;  %v781_v4 = vadd.f32 %v3439_v58, %v669_v0  ;;  %v4374_v56 = vld [vmem:[#allocation7_spill] sm:$0xff] }
  0xce   : > { %2434 = vtanh.f32 %v797_v43  ;;  %v501_v38 = vmul.f32 %v3133_v9, %v3233_v13  ;;  %v703_v8 = vadd.f32 %v639_v47, %v510_v32  ;;  %v704_v16 = vadd.f32 %v640_v36, %v511_v48 }
  0xcf   : > { %v2425_v20 = vpop.eup %2424  ;;  %2436 = vtanh.f32 %v787_v14  ;;  %v502_v49 = vmul.f32 %v3135_v10, %v3233_v13  ;;  %v705_v3 = vadd.f32 %v641_v15, %v512_v57  ;;  %v630_v35 = vmul.f32 %v3159_v23, %v4374_v56  ;;  %v3525_v14 = vld [vmem:[%s4335_s5] sm:$0xff] }
  0xd0   : > { %v2427_v18 = vpop.eup %2426  ;;  %2438 = vtanh.f32 %v788_v44  ;;  %v631_v7 = vmul.f32 %v3165_v26, %v4374_v56  ;;  %v822_v43 = vadd.f32 %v3301_v41, %v3400_v31  ;;  %v823_v25 = vadd.f32 %v3301_v41, %v3435_v21 }
  0xd1   : > { %v2429_v60 = vpop.eup %2428  ;;  %2440 = vtanh.f32 %v789_v45  ;;  %v503_v61 = vmul.f32 %v3151_v19, %v3233_v13  ;;  %v824_v52 = vadd.f32 %v3301_v41, %v3437_v22  ;;  %v825_v31 = vadd.f32 %v3301_v41, %v3446_v40 }
  0xd2   : > { %v2431_v62 = vpop.eup %2430  ;;  %1000 = vmatpush.msra.mxu0 %v2429_v60  ;;  %2442 = vtanh.f32 %v779_v28  ;;  %v694_v50 = vadd.f32 %v630_v35, %v501_v38  ;;  %v814_v24 = vadd.f32 %v3361_v29, %v702_v5  ;;  %v695_v44 = vadd.f32 %v631_v7, %v502_v49  ;;  %v3585_v35 = vld [vmem:[%s4335_s5 + $0x8] sm:$0xff]  ;;  %v4376_v7 = vld [vmem:[#allocation10_spill] sm:$0xff] }
  0xd3   : > { %v2433_v39 = vpop.eup %2432  ;;  %1041 = vmatpush.msra.mxu1 %v2431_v62  ;;  %2444 = vtanh.f32 %v780_v51  ;;  %v504_v0 = vmul.f32 %v3179_v37, %v3233_v13  ;;  %v815_v22 = vadd.f32 %v3361_v29, %v703_v8  ;;  %v816_v41 = vadd.f32 %v3361_v29, %v704_v16 }
  0xd4   : > { %v2435_v1 = vpop.eup %2434  ;;  %1082 = vmatpush.msra.mxu2 %v2433_v39  ;;  %1001 = vmatpush.msra.mxu0 %v2427_v18  ;;  %2446 = vtanh.f32 %v781_v4  ;;  %v632_v40 = vmul.f32 %v3167_v27, %v4374_v56  ;;  %v817_v13 = vadd.f32 %v3361_v29, %v705_v3  ;;  %v806_v48 = vadd.f32 %v3416_v53, %v694_v50 }
  0xd5   : > { %v2437_v21 = vpop.eup %2436  ;;  %1123 = vmatpush.msra.mxu3 %v2435_v1  ;;  %2448 = vtanh.f32 %v3388_v17  ;;  %v633_v17 = vmul.f32 %v3184_v42, %v4374_v56  ;;  %v807_v29 = vadd.f32 %v3416_v53, %v695_v44  ;;  %v495_v15 = vmul.f32 %v3151_v19, %v3295_v34 }
  0xd6   : > { %v2439_v32 = vpop.eup %2438  ;;  %1042 = vmatpush.msra.mxu1 %v2437_v21  ;;  %1002 = vmatpush.msra.mxu0 %v2425_v20  ;;  %2450 = vtanh.f32 %v3433_v30  ;;  %v493_v30 = vmul.f32 %v3133_v9, %v3295_v34  ;;  %v696_v28 = vadd.f32 %v632_v40, %v503_v61  ;;  %v4375_v20 = vld [vmem:[#allocation9_spill] sm:$0xff]  ;;  %v496_v60 = vmul.f32 %v3179_v37, %v3295_v34 }
  0xd7   : > { %v2441_v45 = vpop.eup %2440  ;;  %1083 = vmatpush.msra.mxu2 %v2439_v32  ;;  %2201 = vmatmul.msk.f32.vlgmr.msra.gmra.mxu0 %vm962_vm0, %v3525_v14  ;;  %2452 = vtanh.f32 %v3444_v59  ;;  %v494_v59 = vmul.f32 %v3135_v10, %v3295_v34  ;;  %v697_v57 = vadd.f32 %v633_v17, %v504_v0  ;;  %v622_v51 = vmul.f32 %v3159_v23, %v4375_v20 }
  0xd8   : > { %v2443_v47 = vpop.eup %2442  ;;  %1124 = vmatpush.msra.mxu3 %v2441_v45  ;;  %1159 = vmatpush.msrb.mxu0 %v3396_v55  ;;  %2454 = vtanh.f32 %v3452_v6  ;;  %v808_v55 = vadd.f32 %v3416_v53, %v696_v28  ;;  %v623_v6 = vmul.f32 %v3165_v26, %v4375_v20  ;;  %v624_v49 = vmul.f32 %v3167_v27, %v4375_v20 }
  0xd9   : > { %v2445_v36 = vpop.eup %2444  ;;  %1043 = vmatpush.msra.mxu1 %v2443_v47  ;;  %2456 = vtanh.f32 %v822_v43  ;;  %v809_v4 = vadd.f32 %v3416_v53, %v697_v57  ;;  %v686_v38 = vadd.f32 %v622_v51, %v493_v30  ;;  %v485_v62 = vmul.f32 %v3133_v9, %v3353_v54 }
  0xda   : > { %v2447_v5 = vpop.eup %2446  ;;  %1084 = vmatpush.msra.mxu2 %v2445_v36  ;;  %2209 = vmatmul.msk.f32.vlgmr.msra.gmra.mxu1 %vm962_vm0, %v3525_v14  ;;  %2458 = vtanh.f32 %v823_v25  ;;  %v687_v16 = vadd.f32 %v623_v6, %v494_v59  ;;  %v625_v53 = vmul.f32 %v3184_v42, %v4375_v20  ;;  %v614_v39 = vmul.f32 %v3159_v23, %v4376_v7 }
  0xdb   : > { %v2449_v18 = vpop.eup %2448  ;;  %1125 = vmatpush.msra.mxu3 %v2447_v5  ;;  %2217 = vmatmul.msk.f32.vlgmr.msra.gmra.mxu2 %vm962_vm0, %v3525_v14  ;;  %2460 = vtanh.f32 %v824_v52  ;;  %v798_v34 = vadd.f32 %v3470_v46, %v686_v38  ;;  %v615_v61 = vmul.f32 %v3165_v26, %v4376_v7  ;;  %v487_v1 = vmul.f32 %v3151_v19, %v3353_v54 }
  0xdc   : > { %v2451_v8 = vpop.eup %2450  ;;  %2225 = vmatmul.msk.f32.vlgmr.msra.gmra.mxu3 %vm962_vm0, %v3525_v14  ;;  %1200 = vmatpush.msrb.mxu1 %v3448_v11  ;;  %2462 = vtanh.f32 %v825_v31  ;;  %v486_v11 = vmul.f32 %v3135_v10, %v3353_v54  ;;  %v689_v25 = vadd.f32 %v625_v53, %v496_v60  ;;  %v678_v50 = vadd.f32 %v614_v39, %v485_v62  ;;  %v912_v39 = vld [vmem:[%s4335_s5 + $0x30] sm:$0xff] }
  0xdd   : > { %v2453_v3 = vpop.eup %2452  ;;  %1241 = vmatpush.msrb.mxu2 %v3490_v12  ;;  %1282 = vmatpush.msrb.mxu3 %v3497_v2  ;;  %2464 = vtanh.f32 %v814_v24  ;;  %v799_v12 = vadd.f32 %v3470_v46, %v687_v16  ;;  %v688_v2 = vadd.f32 %v624_v49, %v495_v15  ;;  %v616_v21 = vmul.f32 %v3167_v27, %v4376_v7  ;;  %v909_v49 = vld [vmem:[%s4335_s5 + $0x18] sm:$0xff] }
  0xde   : > { %v2455_v56 = vpop.eup %2454  ;;  %1160 = vmatpush.msrb.mxu0 %v2449_v18  ;;  %1201 = vmatpush.msrb.mxu1 %v2451_v8  ;;  %2466 = vtanh.f32 %v815_v22  ;;  %v801_v44 = vadd.f32 %v3470_v46, %v689_v25  ;;  %v679_v0 = vadd.f32 %v615_v61, %v486_v11  ;;  %v477_v32 = vmul.f32 %v3133_v9, %v3408_v63 }
  0xdf   : > { %v2457_v43 = vpop.eup %2456  ;;  %1242 = vmatpush.msrb.mxu2 %v2453_v3  ;;  %1283 = vmatpush.msrb.mxu3 %v2455_v56  ;;  %2468 = vtanh.f32 %v816_v41  ;;  %v800_v31 = vadd.f32 %v3470_v46, %v688_v2  ;;  %v790_v41 = vadd.f32 %v3461_v33, %v678_v50  ;;  %v488_v40 = vmul.f32 %v3179_v37, %v3353_v54  ;;  %v4377_v46 = vld [vmem:[#allocation14_spill] sm:$0xff]  ;;  %v910_v2 = vld [vmem:[%s4335_s5 + $0x20] sm:$0xff] }
  0xe0   : > { %v2459_v52 = vpop.eup %2458  ;;  %1161 = vmatpush.msrb.mxu0 %v2457_v43  ;;  %2470 = vtanh.f32 %v817_v13  ;;  %v478_v45 = vmul.f32 %v3135_v10, %v3408_v63  ;;  %v680_v9 = vadd.f32 %v616_v21, %v487_v1  ;;  %v606_v17 = vmul.f32 %v3159_v23, %v4377_v46  ;;  %v913_v43 = vld [vmem:[%s4335_s5 + $0x38] sm:$0xff] }
  0xe1   : > { %v2461_v24 = vpop.eup %2460  ;;  %1202 = vmatpush.msrb.mxu1 %v2459_v52  ;;  %2202 = vmatmul.msk.f32.gmra.mxu0 %vm962_vm0, %v3585_v35  ;;  %2472 = vtanh.f32 %v806_v48  ;;  %v479_v30 = vmul.f32 %v3151_v19, %v3408_v63  ;;  %v617_v10 = vmul.f32 %v3184_v42, %v4376_v7  ;;  %v607_v54 = vmul.f32 %v3165_v26, %v4377_v46  ;;  %v911_v7 = vld [vmem:[%s4335_s5 + $0x28] sm:$0xff] }
  0xe2   : > { %v2463_v22 = vpop.eup %2462  ;;  %1243 = vmatpush.msrb.mxu2 %v2461_v24  ;;  %2210 = vmatmul.msk.f32.gmra.mxu1 %vm962_vm0, %v3585_v35  ;;  %2474 = vtanh.f32 %v807_v29  ;;  %v480_v48 = vmul.f32 %v3179_v37, %v3408_v63  ;;  %v791_v19 = vadd.f32 %v3461_v33, %v679_v0  ;;  %v670_v23 = vadd.f32 %v606_v17, %v477_v32  ;;  %v3631_v37 = vld [vmem:[%s4335_s5 + $0x10] sm:$0xff] }
  0xe3   : > { %v2465_v13 = vpop.eup %2464  ;;  %1284 = vmatpush.msrb.mxu3 %v2463_v22  ;;  %2218 = vmatmul.msk.f32.gmra.mxu2 %vm962_vm0, %v3585_v35  ;;  %2476 = vtanh.f32 %v808_v55  ;;  %v608_v59 = vmul.f32 %v3167_v27, %v4377_v46  ;;  %v681_v29 = vadd.f32 %v617_v10, %v488_v40  ;;  %v671_v57 = vadd.f32 %v607_v54, %v478_v45  ;;  %v3740_v40 = vpop.permute.xlu0 %959 }
  0xe4   : > { %v2467_v47 = vpop.eup %2466  ;;  %1162 = vmatpush.msrb.mxu0 %v2465_v13  ;;  %2226 = vmatmul.msk.f32.gmra.mxu3 %vm962_vm0, %v3585_v35  ;;  %2478 = vtanh.f32 %v809_v4  ;;  %v609_v26 = vmul.f32 %v3184_v42, %v4377_v46  ;;  %v792_v20 = vadd.f32 %v3461_v33, %v680_v9  ;;  %v782_v42 = vadd.f32 %v3439_v58, %v670_v23 }
  0xe5   : > { %v2469_v28 = vpop.eup %2468  ;;  %1203 = vmatpush.msrb.mxu1 %v2467_v47  ;;  %2480 = vtanh.f32 %v798_v34  ;;  %v672_v51 = vadd.f32 %v608_v59, %v479_v30  ;;  %v793_v5 = vadd.f32 %v3461_v33, %v681_v29  ;;  %v783_v18 = vadd.f32 %v3439_v58, %v671_v57  ;;  %v3750_v47 = vpop.permute.xlu2 %949 }
  0xe6   : > { %v2471_v36 = vpop.eup %2470  ;;  %1244 = vmatpush.msrb.mxu2 %v2469_v28  ;;  %2482 = vtanh.f32 %v799_v12  ;;  %v673_v55 = vadd.f32 %v609_v26, %v480_v48 }
  0xe7   : > { %v2473_v63 = vpop.eup %2472  ;;  %1285 = vmatpush.msrb.mxu3 %v2471_v36  ;;  %2484 = vtanh.f32 %v800_v31  ;;  %v784_v33 = vadd.f32 %v3439_v58, %v672_v51 }
  0xe8   : > { %v2475_v27 = vpop.eup %2474  ;;  %1163 = vmatpush.msrb.mxu0 %v2473_v63  ;;  %2486 = vtanh.f32 %v801_v44  ;;  %v785_v60 = vadd.f32 %v3439_v58, %v673_v55 }
  0xe9   : > { %v2477_v6 = vpop.eup %2476  ;;  %1204 = vmatpush.msrb.mxu1 %v2475_v27  ;;  %2488 = vtanh.f32 %v790_v41  ;;  %2203 = vmatmul.msk.f32.gmra.mxu0 %vm962_vm0, %v3631_v37  ;;  %v3738_v41 = vpop.permute.xlu1 %954 }
  0xea   : > { %v2479_v15 = vpop.eup %2478  ;;  %1245 = vmatpush.msrb.mxu2 %v2477_v6  ;;  %2490 = vtanh.f32 %v791_v19  ;;  %2211 = vmatmul.msk.f32.gmra.mxu1 %vm962_vm0, %v3631_v37 }
  0xeb   : > { %v2481_v4 = vpop.eup %2480  ;;  %1286 = vmatpush.msrb.mxu3 %v2479_v15  ;;  %2492 = vtanh.f32 %v792_v20  ;;  %2219 = vmatmul.msk.f32.gmra.mxu2 %vm962_vm0, %v3631_v37  ;;  %v3748_v30 = vpop.permute.xlu0 %944 }
  0xec   : > { %v2483_v38 = vpop.eup %2482  ;;  %1164 = vmatpush.msrb.mxu0 %v2481_v4  ;;  %2494 = vtanh.f32 %v793_v5  ;;  %2227 = vmatmul.msk.f32.gmra.mxu3 %vm962_vm0, %v3631_v37 }
  0xed   : > { %v2485_v8 = vpop.eup %2484  ;;  %1205 = vmatpush.msrb.mxu1 %v2483_v38  ;;  %2496 = vtanh.f32 %v782_v42  ;;  %v3763_v20 = vpop.permute.xlu2 %934 }
  0xee   : > { %v2487_v16 = vpop.eup %2486  ;;  %1246 = vmatpush.msrb.mxu2 %v2485_v8  ;;  %2498 = vtanh.f32 %v783_v18 }
  0xef   : > { %v2489_v62 = vpop.eup %2488  ;;  %1287 = vmatpush.msrb.mxu3 %v2487_v16  ;;  %2500 = vtanh.f32 %v784_v33 }
  0xf0   : > { %v2491_v3 = vpop.eup %2490  ;;  %1165 = vmatpush.msrb.mxu0 %v2489_v62  ;;  %2502 = vtanh.f32 %v785_v60 }
  0xf1   : > { %v2493_v58 = vpop.eup %2492  ;;  %1206 = vmatpush.msrb.mxu1 %v2491_v3  ;;  %2204 = vmatmul.msk.f32.gmra.mxu0 %vm962_vm0, %v909_v49  ;;  %v3746_v17 = vpop.permute.xlu1 %939 }
  0xf2   : > { %v2495_v34 = vpop.eup %2494  ;;  %1247 = vmatpush.msrb.mxu2 %v2493_v58  ;;  %2212 = vmatmul.msk.f32.gmra.mxu1 %vm962_vm0, %v909_v49 }
  0xf3   : > { %v2497_v53 = vpop.eup %2496  ;;  %1288 = vmatpush.msrb.mxu3 %v2495_v34  ;;  %2220 = vmatmul.msk.f32.gmra.mxu2 %vm962_vm0, %v909_v49  ;;  %v3758_v23 = vpop.permute.xlu0 %929 }
  0xf4   : > { %v2499_v11 = vpop.eup %2498  ;;  %1166 = vmatpush.msrb.mxu0 %v2497_v53  ;;  %2228 = vmatmul.msk.f32.gmra.mxu3 %vm962_vm0, %v909_v49 }
  0xf5   : > { %v2501_v56 = vpop.eup %2500  ;;  %1207 = vmatpush.msrb.mxu1 %v2499_v11 }
  0xf6   : > { %v2503_v12 = vpop.eup %2502  ;;  %1248 = vmatpush.msrb.mxu2 %v2501_v56 }
  0xf7   : > { %1289 = vmatpush.msrb.mxu3 %v2503_v12 }
  0xf9   : > { %2205 = vmatmul.msk.f32.gmra.mxu0 %vm962_vm0, %v910_v2  ;;  %v3756_v19 = vpop.permute.xlu1 %924 }
  0xfa   : > { %2213 = vmatmul.msk.f32.gmra.mxu1 %vm962_vm0, %v910_v2 }
  0xfb   : > { %2221 = vmatmul.msk.f32.gmra.mxu2 %vm962_vm0, %v910_v2 }
  0xfc   : > { %2229 = vmatmul.msk.f32.gmra.mxu3 %vm962_vm0, %v910_v2 }
 0x101   : > { %2206 = vmatmul.msk.f32.gmra.mxu0 %vm962_vm0, %v911_v7 }
 0x102   : > { %2214 = vmatmul.msk.f32.gmra.mxu1 %vm962_vm0, %v911_v7 }
 0x103   : > { %2222 = vmatmul.msk.f32.gmra.mxu2 %vm962_vm0, %v911_v7 }
 0x104   : > { %2230 = vmatmul.msk.f32.gmra.mxu3 %vm962_vm0, %v911_v7 }
 0x109   : > { %2207 = vmatmul.msk.f32.gmra.mxu0 %vm962_vm0, %v912_v39 }
 0x10a   : > { %2215 = vmatmul.msk.f32.gmra.mxu1 %vm962_vm0, %v912_v39 }
 0x10b   : > { %2223 = vmatmul.msk.f32.gmra.mxu2 %vm962_vm0, %v912_v39 }
 0x10c   : > { %2231 = vmatmul.msk.f32.gmra.mxu3 %vm962_vm0, %v912_v39 }
 0x111   : > { %2208 = vmatmul.msk.f32.gmra.mxu0 %vm962_vm0, %v913_v43 }
 0x112   : > { %2216 = vmatmul.msk.f32.gmra.mxu1 %vm962_vm0, %v913_v43 }
 0x113   : > { %2224 = vmatmul.msk.f32.gmra.mxu2 %vm962_vm0, %v913_v43 }
 0x114   : > { %2232 = vmatmul.msk.f32.gmra.mxu3 %vm962_vm0, %v913_v43 }
 0x119   : > { %2233 = vmatmul.msk.f32.vlgmr.msrb.gmra.mxu0 %vm962_vm0, %v3525_v14 }
 0x11a   : > { %2241 = vmatmul.msk.f32.vlgmr.msrb.gmra.mxu1 %vm962_vm0, %v3525_v14 }
 0x11b   : > { %2249 = vmatmul.msk.f32.vlgmr.msrb.gmra.mxu2 %vm962_vm0, %v3525_v14 }
 0x11c   : > { %2257 = vmatmul.msk.f32.vlgmr.msrb.gmra.mxu3 %vm962_vm0, %v3525_v14 }
 0x121   : > { %2234 = vmatmul.msk.f32.gmra.mxu0 %vm962_vm0, %v3585_v35 }
 0x122   : > { %2242 = vmatmul.msk.f32.gmra.mxu1 %vm962_vm0, %v3585_v35 }
 0x123   : > { %2250 = vmatmul.msk.f32.gmra.mxu2 %vm962_vm0, %v3585_v35 }
 0x124   : > { %2258 = vmatmul.msk.f32.gmra.mxu3 %vm962_vm0, %v3585_v35 }
 0x129   : > { %2235 = vmatmul.msk.f32.gmra.mxu0 %vm962_vm0, %v3631_v37 }
 0x12a   : > { %2243 = vmatmul.msk.f32.gmra.mxu1 %vm962_vm0, %v3631_v37 }
 0x12b   : > { %2251 = vmatmul.msk.f32.gmra.mxu2 %vm962_vm0, %v3631_v37 }
 0x12c   : > { %2259 = vmatmul.msk.f32.gmra.mxu3 %vm962_vm0, %v3631_v37 }
 0x131   : > { %2236 = vmatmul.msk.f32.gmra.mxu0 %vm962_vm0, %v909_v49 }
 0x132   : > { %2244 = vmatmul.msk.f32.gmra.mxu1 %vm962_vm0, %v909_v49 }
 0x133   : > { %2252 = vmatmul.msk.f32.gmra.mxu2 %vm962_vm0, %v909_v49 }
 0x134   : > { %2260 = vmatmul.msk.f32.gmra.mxu3 %vm962_vm0, %v909_v49 }
 0x139   : > { %2237 = vmatmul.msk.f32.gmra.mxu0 %vm962_vm0, %v910_v2 }
 0x13a   : > { %2245 = vmatmul.msk.f32.gmra.mxu1 %vm962_vm0, %v910_v2 }
 0x13b   : > { %2253 = vmatmul.msk.f32.gmra.mxu2 %vm962_vm0, %v910_v2 }
 0x13c   : > { %2261 = vmatmul.msk.f32.gmra.mxu3 %vm962_vm0, %v910_v2 }
 0x141   : > { %2238 = vmatmul.msk.f32.gmra.mxu0 %vm962_vm0, %v911_v7 }
 0x142   : > { %2246 = vmatmul.msk.f32.gmra.mxu1 %vm962_vm0, %v911_v7 }
 0x143   : > { %2254 = vmatmul.msk.f32.gmra.mxu2 %vm962_vm0, %v911_v7 }
 0x144   : > { %2262 = vmatmul.msk.f32.gmra.mxu3 %vm962_vm0, %v911_v7 }
 0x149   : > { %2239 = vmatmul.msk.f32.gmra.mxu0 %vm962_vm0, %v912_v39 }
 0x14a   : > { %2247 = vmatmul.msk.f32.gmra.mxu1 %vm962_vm0, %v912_v39 }
 0x14b   : > { %2255 = vmatmul.msk.f32.gmra.mxu2 %vm962_vm0, %v912_v39 }
 0x14c   : > { %2263 = vmatmul.msk.f32.gmra.mxu3 %vm962_vm0, %v912_v39 }
 0x151   : > { %2240 = vmatmul.msk.f32.gmra.mxu0 %vm962_vm0, %v913_v43 }
 0x152   : > { %2248 = vmatmul.msk.f32.gmra.mxu1 %vm962_vm0, %v913_v43 }
 0x153   : > { %2256 = vmatmul.msk.f32.gmra.mxu2 %vm962_vm0, %v913_v43 }
 0x154   : > { %2264 = vmatmul.msk.f32.gmra.mxu3 %vm962_vm0, %v913_v43  ;;  %v1004_v14 = vpop.f32.mrf.mxu0 }
 0x155   : > { %v1005_v59 = vadd.f32 %v1004_v14, %v3756_v19 }
 0x157   : > { %v1045_v35 = vpop.f32.mrf.mxu1  ;;  %2504 = vtanh.f32 %v1005_v59 }
 0x158   : > { %v1046_v36 = vadd.f32 %v1045_v35, %v3756_v19 }
 0x15a   : > { %2506 = vtanh.f32 %v1046_v36 }
 0x15d   : > { %v3772_v33 = vpop.eup %2504 }
 0x15e   : > { %v3726_v25 = vpop.f32.mrf.mxu2  ;;  %v1007_v61 = vpop.f32.mrf.mxu0 }
 0x15f   : > { %v3728_v1 = vpop.f32.mrf.mxu3  ;;  %v1048_v52 = vpop.f32.mrf.mxu1  ;;  %v1008_v26 = vadd.f32 %v1007_v61, %v3758_v23 }
 0x160   : > { %v1049_v51 = vadd.f32 %v1048_v52, %v3758_v23  ;;  %v3775_v16 = vpop.eup %2506 }
 0x161   : > { %2508 = vtanh.f32 %v1008_v26 }
 0x162   : > { %2510 = vtanh.f32 %v1049_v51 }
 0x166   : > { %v3730_v31 = vpop.f32.mrf.mxu2  ;;  %v1010_v50 = vpop.f32.mrf.mxu0 }
 0x167   : > { %v3732_v21 = vpop.f32.mrf.mxu3  ;;  %v1051_v24 = vpop.f32.mrf.mxu1  ;;  %v1011_v27 = vadd.f32 %v1010_v50, %v3763_v20 }
 0x168   : > { %v1052_v5 = vadd.f32 %v1051_v24, %v3763_v20  ;;  %v3778_v62 = vpop.eup %2508 }
 0x169   : > { %2512 = vtanh.f32 %v1011_v27  ;;  %v3781_v58 = vpop.eup %2510 }
 0x16a   : > { %2514 = vtanh.f32 %v1052_v5 }
 0x16e   : > { %v3734_v44 = vpop.f32.mrf.mxu2  ;;  %v1013_v0 = vpop.f32.mrf.mxu0 }
 0x16f   : > { %v3736_v32 = vpop.f32.mrf.mxu3  ;;  %v1054_v22 = vpop.f32.mrf.mxu1  ;;  %v1014_v55 = vadd.f32 %v1013_v0, %v3746_v17 }
 0x170   : > { %v1055_v6 = vadd.f32 %v1054_v22, %v3746_v17  ;;  %v3784_v53 = vpop.eup %2512 }
 0x171   : > { %2516 = vtanh.f32 %v1014_v55  ;;  %v3787_v56 = vpop.eup %2514 }
 0x172   : > { %2518 = vtanh.f32 %v1055_v6 }
 0x176   : > { %v3742_v45 = vpop.f32.mrf.mxu2  ;;  %v1016_v13 = vpop.f32.mrf.mxu0 }
 0x177   : > { %v3744_v9 = vpop.f32.mrf.mxu3  ;;  %v1057_v46 = vpop.f32.mrf.mxu1  ;;  %v1017_v42 = vadd.f32 %v1016_v13, %v3748_v30 }
 0x178   : > { %v1058_v15 = vadd.f32 %v1057_v46, %v3748_v30  ;;  %v2517_v2 = vpop.eup %2516  ;;  %v1137_v51 = vadd.f32 %v3744_v9, %v3746_v17  ;;  %v1134_v9 = vadd.f32 %v3736_v32, %v3763_v20  ;;  %v1087_v32 = vadd.f32 %v3726_v25, %v3756_v19 }
 0x179   : > { %2520 = vtanh.f32 %v1017_v42  ;;  %v2519_v7 = vpop.eup %2518 }
 0x17a   : > { %2522 = vtanh.f32 %v1058_v15  ;;  %v1090_v15 = vadd.f32 %v3730_v31, %v3758_v23  ;;  %v1128_v31 = vadd.f32 %v3728_v1, %v3756_v19 }
 0x17e   : > { %v3752_v10 = vpop.f32.mrf.mxu2  ;;  %v1019_v54 = vpop.f32.mrf.mxu0 }
 0x17f   : > { %v3754_v48 = vpop.f32.mrf.mxu3  ;;  %v1060_v28 = vpop.f32.mrf.mxu1  ;;  %v1020_v11 = vadd.f32 %v1019_v54, %v3750_v47  ;;  %v1099_v36 = vadd.f32 %v3752_v10, %v3748_v30 }
 0x180   : > { %v1061_v12 = vadd.f32 %v1060_v28, %v3750_v47  ;;  %v2521_v14 = vpop.eup %2520  ;;  %v1140_v26 = vadd.f32 %v3754_v48, %v3748_v30  ;;  %v1093_v48 = vadd.f32 %v3734_v44, %v3763_v20 }
 0x181   : > { %v2523_v24 = vpop.eup %2522 }
 0x186   : > { %v1101_v29 = vpop.f32.mrf.mxu2  ;;  %v1022_v57 = vpop.f32.mrf.mxu0 }
 0x187   : > { %v1142_v37 = vpop.f32.mrf.mxu3  ;;  %v1063_v63 = vpop.f32.mrf.mxu1  ;;  %v1023_v3 = vadd.f32 %v1022_v57, %v3738_v41  ;;  %v1102_v46 = vadd.f32 %v1101_v29, %v3750_v47  ;;  %v1096_v29 = vadd.f32 %v3742_v45, %v3746_v17 }
 0x188   : > { %v1064_v34 = vadd.f32 %v1063_v63, %v3738_v41  ;;  %v1143_v28 = vadd.f32 %v1142_v37, %v3750_v47 }
 0x18e   : > { %v1104_v18 = vpop.f32.mrf.mxu2  ;;  %v1025_v4 = vpop.f32.mrf.mxu0 }
 0x18f   : > { %v1145_v38 = vpop.f32.mrf.mxu3  ;;  %v1026_v60 = vadd.f32 %v1025_v4, %v3740_v40  ;;  %v1066_v8 = vpop.f32.mrf.mxu1  ;;  %v1105_v35 = vadd.f32 %v1104_v18, %v3738_v41  ;;  %v1131_v18 = vadd.f32 %v3732_v21, %v3758_v23 }
 0x190   : > { %v1067_v49 = vadd.f32 %v1066_v8, %v3740_v40  ;;  %v1146_v0 = vadd.f32 %v1145_v38, %v3738_v41 }
 0x191   : > { %2524 = vtanh.f32 %v1026_v60 }
 0x192   : > { %2526 = vtanh.f32 %v1067_v49 }
 0x193   : > { %2528 = vtanh.f32 %v1023_v3 }
 0x194   : > { %2530 = vtanh.f32 %v1064_v34  ;;  %v3843_v34 = vld [vmem:[%s4337_s7] sm:$0xff] }
 0x195   : > { %2532 = vtanh.f32 %v1020_v11 }
 0x196   : > { %v1107_v39 = vpop.f32.mrf.mxu2  ;;  %v3790_v43 = vpop.f32.mrf.mxu0  ;;  %2534 = vtanh.f32 %v1061_v12 }
 0x197   : > { %v1108_v61 = vadd.f32 %v1107_v39, %v3740_v40  ;;  %v1148_v52 = vpop.f32.mrf.mxu3  ;;  %v3794_v50 = vpop.f32.mrf.mxu1 }
 0x198   : > { %v1149_v22 = vadd.f32 %v1148_v52, %v3740_v40  ;;  %v2525_v13 = vpop.eup %2524 }
 0x199   : > { %2536 = vtanh.f32 %v1108_v61  ;;  %v2527_v54 = vpop.eup %2526  ;;  %1467 = vmatpush.msra.mxu0 %v2525_v13 }
 0x19a   : > { %2538 = vtanh.f32 %v1149_v22  ;;  %v2529_v59 = vpop.eup %2528  ;;  %1508 = vmatpush.msra.mxu1 %v2527_v54 }
 0x19b   : > { %2540 = vtanh.f32 %v1105_v35  ;;  %v2531_v57 = vpop.eup %2530  ;;  %1468 = vmatpush.msra.mxu0 %v2529_v59 }
 0x19c   : > { %2542 = vtanh.f32 %v1146_v0  ;;  %v2533_v63 = vpop.eup %2532  ;;  %1509 = vmatpush.msra.mxu1 %v2531_v57  ;;  %v3879_v0 = vld [vmem:[%s4337_s7 + $0x10] sm:$0xff] }
 0x19d   : > { %2544 = vtanh.f32 %v1102_v46  ;;  %v2535_v37 = vpop.eup %2534  ;;  %1469 = vmatpush.msra.mxu0 %v2533_v63  ;;  %v3913_v63 = vld [vmem:[%s4337_s7 + $0x20] sm:$0xff] }
 0x19e   : > { %2546 = vtanh.f32 %v1143_v28  ;;  %v3808_v10 = vpop.f32.mrf.mxu2  ;;  %v3810_v27 = vpop.f32.mrf.mxu0  ;;  %1510 = vmatpush.msra.mxu1 %v2535_v37  ;;  %v3896_v28 = vld [vmem:[%s4337_s7 + $0x18] sm:$0xff] }
 0x19f   : > { %v2537_v5 = vpop.eup %2536  ;;  %2548 = vtanh.f32 %v1099_v36  ;;  %v3814_v55 = vpop.f32.mrf.mxu3  ;;  %1470 = vmatpush.msra.mxu0 %v2521_v14  ;;  %v3862_v14 = vld [vmem:[%s4337_s7 + $0x8] sm:$0xff]  ;;  %v1172_v37 = vadd.f32 %v3810_v27, %v3758_v23 }
 0x1a0   : > { %v3816_v45 = vpop.f32.mrf.mxu1  ;;  %v2539_v6 = vpop.eup %2538  ;;  %2550 = vtanh.f32 %v1140_v26  ;;  %1549 = vmatpush.msra.mxu2 %v2537_v5  ;;  %1511 = vmatpush.msra.mxu1 %v2523_v24 }
 0x1a1   : > { %v2541_v42 = vpop.eup %2540  ;;  %2552 = vtanh.f32 %v1096_v29  ;;  %1590 = vmatpush.msra.mxu3 %v2539_v6  ;;  %1471 = vmatpush.msra.mxu0 %v2517_v2  ;;  %v1169_v29 = vadd.f32 %v3790_v43, %v3756_v19 }
 0x1a2   : > { %v2543_v44 = vpop.eup %2542  ;;  %2554 = vtanh.f32 %v1137_v51  ;;  %1550 = vmatpush.msra.mxu2 %v2541_v42  ;;  %1512 = vmatpush.msra.mxu1 %v2519_v7  ;;  %v1213_v51 = vadd.f32 %v3816_v45, %v3758_v23 }
 0x1a3   : > { %v2545_v4 = vpop.eup %2544  ;;  %2556 = vtanh.f32 %v1093_v48  ;;  %1591 = vmatpush.msra.mxu3 %v2543_v44  ;;  %1472 = vmatpush.msra.mxu0 %v3784_v53  ;;  %v3939_v44 = vld [vmem:[%s4337_s7 + $0x28] sm:$0xff] }
 0x1a4   : > { %v2547_v38 = vpop.eup %2546  ;;  %2558 = vtanh.f32 %v1134_v9  ;;  %1551 = vmatpush.msra.mxu2 %v2545_v4  ;;  %1513 = vmatpush.msra.mxu1 %v3787_v56 }
 0x1a5   : > { %v2549_v60 = vpop.eup %2548  ;;  %2560 = vtanh.f32 %v1090_v15  ;;  %1592 = vmatpush.msra.mxu3 %v2547_v38  ;;  %1473 = vmatpush.msra.mxu0 %v3778_v62 }
 0x1a6   : > { %v2551_v21 = vpop.eup %2550  ;;  %2562 = vtanh.f32 %v1131_v18  ;;  %v3830_v8 = vpop.f32.mrf.mxu2  ;;  %1552 = vmatpush.msra.mxu2 %v2549_v60  ;;  %1514 = vmatpush.msra.mxu1 %v3781_v58 }
 0x1a7   : > { %v3833_v25 = vpop.f32.mrf.mxu0  ;;  %v2553_v49 = vpop.eup %2552  ;;  %2564 = vtanh.f32 %v1087_v32  ;;  %1593 = vmatpush.msra.mxu3 %v2551_v21  ;;  %1474 = vmatpush.msra.mxu0 %v3772_v33 }
 0x1a8   : > { %v3835_v1 = vpop.f32.mrf.mxu3  ;;  %v3838_v3 = vpop.f32.mrf.mxu1  ;;  %2566 = vtanh.f32 %v1128_v31  ;;  %1553 = vmatpush.msra.mxu2 %v2553_v49  ;;  %1515 = vmatpush.msra.mxu1 %v3775_v16  ;;  %v1175_v43 = vadd.f32 %v3833_v25, %v3763_v20 }
 0x1a9   : > { %v2555_v53 = vpop.eup %2554  ;;  %2265 = vmatmul.msk.f32.vlgmr.msra.gmra.mxu0 %vm962_vm0, %v3843_v34  ;;  %2273 = vmatmul.msk.f32.vlgmr.msra.gmra.mxu1 %vm962_vm0, %v3843_v34  ;;  %2568 = vtanh.f32 %v1169_v29  ;;  %v1216_v5 = vadd.f32 %v3838_v3, %v3763_v20 }
 0x1aa   : > { %v2557_v62 = vpop.eup %2556  ;;  %1594 = vmatpush.msra.mxu3 %v2555_v53  ;;  %2570 = vtanh.f32 %v1172_v37 }
 0x1ab   : > { %v2559_v11 = vpop.eup %2558  ;;  %1554 = vmatpush.msra.mxu2 %v2557_v62  ;;  %2572 = vtanh.f32 %v1213_v51 }
 0x1ac   : > { %v2561_v58 = vpop.eup %2560  ;;  %1595 = vmatpush.msra.mxu3 %v2559_v11  ;;  %2574 = vtanh.f32 %v1175_v43 }
 0x1ad   : > { %v2563_v56 = vpop.eup %2562  ;;  %1555 = vmatpush.msra.mxu2 %v2561_v58  ;;  %2576 = vtanh.f32 %v1216_v5  ;;  %v1210_v5 = vadd.f32 %v3794_v50, %v3756_v19 }
 0x1ae   : > { %v2565_v12 = vpop.eup %2564  ;;  %1596 = vmatpush.msra.mxu3 %v2563_v56  ;;  %v3851_v2 = vpop.f32.mrf.mxu2 }
 0x1af   : > { %v2567_v33 = vpop.eup %2566  ;;  %v3853_v7 = vpop.f32.mrf.mxu0  ;;  %1556 = vmatpush.msra.mxu2 %v2565_v12  ;;  %v3970_v12 = vld [vmem:[%s4337_s7 + $0x30] sm:$0xff] }
 0x1b0   : > { %v3855_v16 = vpop.f32.mrf.mxu3  ;;  %1597 = vmatpush.msra.mxu3 %v2567_v33  ;;  %v3857_v39 = vpop.f32.mrf.mxu1  ;;  %2281 = vmatmul.msk.f32.vlgmr.msra.gmra.mxu2 %vm962_vm0, %v3843_v34  ;;  %v1178_v11 = vadd.f32 %v3853_v7, %v3746_v17 }
 0x1b1   : > { %2289 = vmatmul.msk.f32.vlgmr.msra.gmra.mxu3 %vm962_vm0, %v3843_v34  ;;  %2266 = vmatmul.msk.f32.gmra.mxu0 %vm962_vm0, %v3862_v14  ;;  %v3947_v32 = vpop.eup %2568 }
 0x1b2   : > { %2274 = vmatmul.msk.f32.gmra.mxu1 %vm962_vm0, %v3862_v14  ;;  %v3954_v31 = vpop.eup %2570 }
 0x1b3   : > { %v3957_v21 = vpop.eup %2572 }
 0x1b4   : > { %v3960_v49 = vpop.eup %2574 }
 0x1b5   : > { %v3962_v3 = vpop.eup %2576 }
 0x1b6   : > { %v3872_v35 = vpop.f32.mrf.mxu2 }
 0x1b7   : > { %v1180_v61 = vpop.f32.mrf.mxu0 }
 0x1b8   : > { %v3874_v52 = vpop.f32.mrf.mxu3  ;;  %v1221_v24 = vpop.f32.mrf.mxu1  ;;  %2282 = vmatmul.msk.f32.gmra.mxu2 %vm962_vm0, %v3862_v14  ;;  %v1181_v48 = vadd.f32 %v1180_v61, %v3748_v30  ;;  %v1219_v61 = vadd.f32 %v3857_v39, %v3746_v17 }
 0x1b9   : > { %2290 = vmatmul.msk.f32.gmra.mxu3 %vm962_vm0, %v3862_v14  ;;  %2267 = vmatmul.msk.f32.gmra.mxu0 %vm962_vm0, %v3879_v0  ;;  %v1222_v27 = vadd.f32 %v1221_v24, %v3748_v30 }
 0x1ba   : > { %2275 = vmatmul.msk.f32.gmra.mxu1 %vm962_vm0, %v3879_v0  ;;  %2578 = vtanh.f32 %v1181_v48 }
 0x1bb   : > { %2580 = vtanh.f32 %v1222_v27  ;;  %v1298_v27 = vadd.f32 %v3855_v16, %v3763_v20  ;;  %v1251_v16 = vadd.f32 %v3808_v10, %v3756_v19 }
 0x1be   : > { %v3889_v22 = vpop.f32.mrf.mxu2 }
 0x1bf   : > { %v1183_v13 = vpop.f32.mrf.mxu0  ;;  %v1263_v37 = vadd.f32 %v3889_v22, %v3748_v30  ;;  %v1301_v22 = vadd.f32 %v3874_v52, %v3746_v17  ;;  %v1254_v52 = vadd.f32 %v3830_v8, %v3758_v23 }
 0x1c0   : > { %v3891_v46 = vpop.f32.mrf.mxu3  ;;  %v1224_v54 = vpop.f32.mrf.mxu1  ;;  %2283 = vmatmul.msk.f32.gmra.mxu2 %vm962_vm0, %v3879_v0  ;;  %v1184_v60 = vadd.f32 %v1183_v13, %v3750_v47 }
 0x1c1   : > { %2291 = vmatmul.msk.f32.gmra.mxu3 %vm962_vm0, %v3879_v0  ;;  %2268 = vmatmul.msk.f32.gmra.mxu0 %vm962_vm0, %v3896_v28  ;;  %v1225_v25 = vadd.f32 %v1224_v54, %v3750_v47  ;;  %v2579_v62 = vpop.eup %2578  ;;  %v1304_v43 = vadd.f32 %v3891_v46, %v3748_v30  ;;  %v4004_v30 = vld [vmem:[%s4337_s7 + $0x38] sm:$0xff]  ;;  %v1257_v46 = vadd.f32 %v3851_v2, %v3763_v20 }
 0x1c2   : > { %2276 = vmatmul.msk.f32.gmra.mxu1 %vm962_vm0, %v3896_v28  ;;  %v2581_v33 = vpop.eup %2580 }
 0x1c6   : > { %v3906_v59 = vpop.f32.mrf.mxu2 }
 0x1c7   : > { %v1186_v36 = vpop.f32.mrf.mxu0  ;;  %v1266_v39 = vadd.f32 %v3906_v59, %v3750_v47 }
 0x1c8   : > { %v3908_v57 = vpop.f32.mrf.mxu3  ;;  %v1227_v26 = vpop.f32.mrf.mxu1  ;;  %2284 = vmatmul.msk.f32.gmra.mxu2 %vm962_vm0, %v3896_v28  ;;  %v1187_v4 = vadd.f32 %v1186_v36, %v3738_v41 }
 0x1c9   : > { %2292 = vmatmul.msk.f32.gmra.mxu3 %vm962_vm0, %v3896_v28  ;;  %2269 = vmatmul.msk.f32.gmra.mxu0 %vm962_vm0, %v3913_v63  ;;  %v1228_v38 = vadd.f32 %v1227_v26, %v3738_v41  ;;  %v1307_v29 = vadd.f32 %v3908_v57, %v3750_v47  ;;  %v1260_v57 = vadd.f32 %v3872_v35, %v3746_v17 }
 0x1ca   : > { %2277 = vmatmul.msk.f32.gmra.mxu1 %vm962_vm0, %v3913_v63 }
 0x1ce   : > { %v1268_v45 = vpop.f32.mrf.mxu2 }
 0x1cf   : > { %v1189_v6 = vpop.f32.mrf.mxu0  ;;  %v1269_v13 = vadd.f32 %v1268_v45, %v3738_v41  ;;  %v1295_v45 = vadd.f32 %v3835_v1, %v3758_v23 }
 0x1d0   : > { %v1309_v9 = vpop.f32.mrf.mxu3  ;;  %v1190_v42 = vadd.f32 %v1189_v6, %v3740_v40  ;;  %v1230_v15 = vpop.f32.mrf.mxu1  ;;  %2285 = vmatmul.msk.f32.gmra.mxu2 %vm962_vm0, %v3913_v63  ;;  %v1292_v6 = vadd.f32 %v3814_v55, %v3756_v19 }
 0x1d1   : > { %2293 = vmatmul.msk.f32.gmra.mxu3 %vm962_vm0, %v3913_v63  ;;  %v1231_v18 = vadd.f32 %v1230_v15, %v3740_v40  ;;  %2270 = vmatmul.msk.f32.gmra.mxu0 %vm962_vm0, %v3939_v44  ;;  %v1310_v36 = vadd.f32 %v1309_v9, %v3738_v41 }
 0x1d2   : > { %2278 = vmatmul.msk.f32.gmra.mxu1 %vm962_vm0, %v3939_v44  ;;  %2582 = vtanh.f32 %v1190_v42 }
 0x1d3   : > { %2584 = vtanh.f32 %v1231_v18 }
 0x1d4   : > { %2586 = vtanh.f32 %v1187_v4 }
 0x1d5   : > { %2588 = vtanh.f32 %v1228_v38 }
 0x1d6   : > { %v1271_v53 = vpop.f32.mrf.mxu2  ;;  %2590 = vtanh.f32 %v1184_v60 }
 0x1d7   : > { %v1272_v58 = vadd.f32 %v1271_v53, %v3740_v40  ;;  %2592 = vtanh.f32 %v1225_v25 }
 0x1d8   : > { %v1312_v56 = vpop.f32.mrf.mxu3  ;;  %2286 = vmatmul.msk.f32.gmra.mxu2 %vm962_vm0, %v3939_v44  ;;  %v2583_v7 = vpop.eup %2582 }
 0x1d9   : > { %v1313_v24 = vadd.f32 %v1312_v56, %v3740_v40  ;;  %2294 = vmatmul.msk.f32.gmra.mxu3 %vm962_vm0, %v3939_v44  ;;  %2594 = vtanh.f32 %v1272_v58  ;;  %v2585_v54 = vpop.eup %2584  ;;  %2271 = vmatmul.msk.f32.gmra.mxu0 %vm962_vm0, %v3970_v12 }
 0x1da   : > { %2279 = vmatmul.msk.f32.gmra.mxu1 %vm962_vm0, %v3970_v12  ;;  %v2587_v40 = vpop.eup %2586  ;;  %1631 = vmatpush.msrb.mxu0 %v2583_v7 }
 0x1db   : > { %2596 = vtanh.f32 %v1313_v24  ;;  %1672 = vmatpush.msrb.mxu1 %v2585_v54  ;;  %v2589_v26 = vpop.eup %2588 }
 0x1dc   : > { %2598 = vtanh.f32 %v1178_v11  ;;  %v2591_v41 = vpop.eup %2590  ;;  %1632 = vmatpush.msrb.mxu0 %v2587_v40 }
 0x1dd   : > { %2600 = vtanh.f32 %v1219_v61  ;;  %1673 = vmatpush.msrb.mxu1 %v2589_v26  ;;  %v2593_v51 = vpop.eup %2592 }
 0x1de   : > { %2602 = vtanh.f32 %v1269_v13  ;;  %1633 = vmatpush.msrb.mxu0 %v2591_v41 }
 0x1df   : > { %2604 = vtanh.f32 %v1310_v36  ;;  %v2595_v59 = vpop.eup %2594  ;;  %1674 = vmatpush.msrb.mxu1 %v2593_v51 }
 0x1e0   : > { %2606 = vtanh.f32 %v1266_v39  ;;  %2287 = vmatmul.msk.f32.gmra.mxu2 %vm962_vm0, %v3970_v12  ;;  %1634 = vmatpush.msrb.mxu0 %v2579_v62 }
 0x1e1   : > { %v2597_v47 = vpop.eup %2596  ;;  %2608 = vtanh.f32 %v1307_v29  ;;  %2295 = vmatmul.msk.f32.gmra.mxu3 %vm962_vm0, %v3970_v12  ;;  %1675 = vmatpush.msrb.mxu1 %v2581_v33 }
 0x1e2   : > { %v2599_v50 = vpop.eup %2598  ;;  %2610 = vtanh.f32 %v1263_v37  ;;  %1713 = vmatpush.msrb.mxu2 %v2595_v59  ;;  %1754 = vmatpush.msrb.mxu3 %v2597_v47 }
 0x1e3   : > { %v2601_v35 = vpop.eup %2600  ;;  %2612 = vtanh.f32 %v1304_v43  ;;  %2272 = vmatmul.msk.f32.gmra.mxu0 %vm962_vm0, %v4004_v30  ;;  %2280 = vmatmul.msk.f32.gmra.mxu1 %vm962_vm0, %v4004_v30 }
 0x1e4   : > { %v2603_v48 = vpop.eup %2602  ;;  %2614 = vtanh.f32 %v1210_v5  ;;  %1635 = vmatpush.msrb.mxu0 %v2599_v50  ;;  %1676 = vmatpush.msrb.mxu1 %v2601_v35 }
 0x1e5   : > { %v2605_v17 = vpop.eup %2604  ;;  %2616 = vtanh.f32 %v1260_v57  ;;  %1714 = vmatpush.msrb.mxu2 %v2603_v48 }
 0x1e6   : > { %v2607_v2 = vpop.eup %2606  ;;  %2618 = vtanh.f32 %v1301_v22  ;;  %1755 = vmatpush.msrb.mxu3 %v2605_v17  ;;  %1636 = vmatpush.msrb.mxu0 %v3960_v49 }
 0x1e7   : > { %v2609_v20 = vpop.eup %2608  ;;  %2620 = vtanh.f32 %v1257_v46  ;;  %1677 = vmatpush.msrb.mxu1 %v3962_v3  ;;  %1715 = vmatpush.msrb.mxu2 %v2607_v2 }
 0x1e8   : > { %v2611_v8 = vpop.eup %2610  ;;  %2622 = vtanh.f32 %v1298_v27  ;;  %1756 = vmatpush.msrb.mxu3 %v2609_v20  ;;  %1637 = vmatpush.msrb.mxu0 %v3954_v31 }
 0x1e9   : > { %v2613_v23 = vpop.eup %2612  ;;  %2624 = vtanh.f32 %v1254_v52  ;;  %1678 = vmatpush.msrb.mxu1 %v3957_v21  ;;  %1716 = vmatpush.msrb.mxu2 %v2611_v8 }
 0x1ea   : > { %v2615_v1 = vpop.eup %2614  ;;  %2626 = vtanh.f32 %v1295_v45  ;;  %1757 = vmatpush.msrb.mxu3 %v2613_v23  ;;  %2288 = vmatmul.msk.f32.gmra.mxu2 %vm962_vm0, %v4004_v30 }
 0x1eb   : > { %v2617_v10 = vpop.eup %2616  ;;  %2628 = vtanh.f32 %v1251_v16  ;;  %2296 = vmatmul.msk.f32.gmra.mxu3 %vm962_vm0, %v4004_v30  ;;  %1638 = vmatpush.msrb.mxu0 %v3947_v32 }
 0x1ec   : > { %v2619_v19 = vpop.eup %2618  ;;  %2630 = vtanh.f32 %v1292_v6  ;;  %1679 = vmatpush.msrb.mxu1 %v2615_v1  ;;  %1717 = vmatpush.msrb.mxu2 %v2617_v10 }
 0x1ed   : > { %v2621_v55 = vpop.eup %2620  ;;  %1758 = vmatpush.msrb.mxu3 %v2619_v19  ;;  %2297 = vmatmul.msk.f32.vlgmr.msrb.gmra.mxu0 %vm962_vm0, %v3843_v34 }
 0x1ee   : > { %v2623_v9 = vpop.eup %2622  ;;  %2305 = vmatmul.msk.f32.vlgmr.msrb.gmra.mxu1 %vm962_vm0, %v3843_v34  ;;  %1718 = vmatpush.msrb.mxu2 %v2621_v55 }
 0x1ef   : > { %v2625_v42 = vpop.eup %2624  ;;  %1759 = vmatpush.msrb.mxu3 %v2623_v9 }
 0x1f0   : > { %v2627_v15 = vpop.eup %2626  ;;  %1719 = vmatpush.msrb.mxu2 %v2625_v42 }
 0x1f1   : > { %v2629_v18 = vpop.eup %2628  ;;  %1760 = vmatpush.msrb.mxu3 %v2627_v15 }
 0x1f2   : > { %v2631_v4 = vpop.eup %2630  ;;  %1720 = vmatpush.msrb.mxu2 %v2629_v18 }
 0x1f3   : > { %1761 = vmatpush.msrb.mxu3 %v2631_v4  ;;  %2313 = vmatmul.msk.f32.vlgmr.msrb.gmra.mxu2 %vm962_vm0, %v3843_v34 }
 0x1f4   : > { %2321 = vmatmul.msk.f32.vlgmr.msrb.gmra.mxu3 %vm962_vm0, %v3843_v34  ;;  %v4085_v34 = vpop.permute.xlu2 %1397 }
 0x1f5   : > { %2298 = vmatmul.msk.f32.gmra.mxu0 %vm962_vm0, %v3862_v14 }
 0x1f6   : > { %2306 = vmatmul.msk.f32.gmra.mxu1 %vm962_vm0, %v3862_v14 }
 0x1fb   : > { %2314 = vmatmul.msk.f32.gmra.mxu2 %vm962_vm0, %v3862_v14 }
 0x1fc   : > { %2322 = vmatmul.msk.f32.gmra.mxu3 %vm962_vm0, %v3862_v14  ;;  %v4091_v14 = vpop.permute.xlu0 %1402 }
 0x1fd   : > { %2299 = vmatmul.msk.f32.gmra.mxu0 %vm962_vm0, %v3879_v0 }
 0x1fe   : > { %2307 = vmatmul.msk.f32.gmra.mxu1 %vm962_vm0, %v3879_v0 }
 0x203   : > { %2315 = vmatmul.msk.f32.gmra.mxu2 %vm962_vm0, %v3879_v0 }
 0x204   : > { %2323 = vmatmul.msk.f32.gmra.mxu3 %vm962_vm0, %v3879_v0  ;;  %v4107_v31 = vpop.permute.xlu0 %1417 }
 0x205   : > { %2300 = vmatmul.msk.f32.gmra.mxu0 %vm962_vm0, %v3896_v28 }
 0x206   : > { %2308 = vmatmul.msk.f32.gmra.mxu1 %vm962_vm0, %v3896_v28 }
 0x20b   : > { %2316 = vmatmul.msk.f32.gmra.mxu2 %vm962_vm0, %v3896_v28 }
 0x20c   : > { %2324 = vmatmul.msk.f32.gmra.mxu3 %vm962_vm0, %v3896_v28  ;;  %v4115_v24 = vpop.permute.xlu0 %1866 }
 0x20d   : > { %2301 = vmatmul.msk.f32.gmra.mxu0 %vm962_vm0, %v3913_v63 }
 0x20e   : > { %2309 = vmatmul.msk.f32.gmra.mxu1 %vm962_vm0, %v3913_v63 }
 0x213   : > { %2317 = vmatmul.msk.f32.gmra.mxu2 %vm962_vm0, %v3913_v63 }
 0x214   : > { %2325 = vmatmul.msk.f32.gmra.mxu3 %vm962_vm0, %v3913_v63  ;;  %v4097_v63 = vpop.permute.xlu1 %1407 }
 0x215   : > { %2302 = vmatmul.msk.f32.gmra.mxu0 %vm962_vm0, %v3939_v44 }
 0x216   : > { %2310 = vmatmul.msk.f32.gmra.mxu1 %vm962_vm0, %v3939_v44 }
 0x21b   : > { %2318 = vmatmul.msk.f32.gmra.mxu2 %vm962_vm0, %v3939_v44 }
 0x21c   : > { %2326 = vmatmul.msk.f32.gmra.mxu3 %vm962_vm0, %v3939_v44  ;;  %v4103_v44 = vpop.permute.xlu2 %1412  ;;  %v4111_v62 = vpop.permute.xlu1 %1422 }
 0x21d   : > { %2303 = vmatmul.msk.f32.gmra.mxu0 %vm962_vm0, %v3970_v12 }
 0x21e   : > { %2311 = vmatmul.msk.f32.gmra.mxu1 %vm962_vm0, %v3970_v12 }
 0x223   : > { %2319 = vmatmul.msk.f32.gmra.mxu2 %vm962_vm0, %v3970_v12 }
 0x224   : > { %2327 = vmatmul.msk.f32.gmra.mxu3 %vm962_vm0, %v3970_v12  ;;  %v4113_v58 = vpop.permute.xlu2 %1861  ;;  %v4127_v57 = vpop.permute.xlu1 %1427 }
 0x225   : > { %2304 = vmatmul.msk.f32.gmra.mxu0 %vm962_vm0, %v4004_v30 }
 0x226   : > { %2312 = vmatmul.msk.f32.gmra.mxu1 %vm962_vm0, %v4004_v30  ;;  %v1476_v0 = vpop.f32.mrf.mxu0  ;;  %v1517_v28 = vpop.f32.mrf.mxu1 }
 0x227   : > { %v1477_v32 = vadd.f32 %v1476_v0, %v4085_v34  ;;  %v1518_v38 = vadd.f32 %v1517_v28, %v4085_v34 }
 0x229   : > { %2632 = vtanh.f32 %v1477_v32 }
 0x22a   : > { %2634 = vtanh.f32 %v1518_v38 }
 0x22b   : > { %2320 = vmatmul.msk.f32.gmra.mxu2 %vm962_vm0, %v4004_v30 }
 0x22c   : > { %2328 = vmatmul.msk.f32.gmra.mxu3 %vm962_vm0, %v4004_v30  ;;  %v4129_v35 = vpop.permute.xlu2 %1871  ;;  %v4141_v32 = vpop.permute.xlu1 %1876 }
 0x22e   : > { %v1479_v60 = vpop.f32.mrf.mxu0 }
 0x22f   : > { %v1520_v21 = vpop.f32.mrf.mxu1  ;;  %v1480_v25 = vadd.f32 %v1479_v60, %v4091_v14  ;;  %v2633_v11 = vpop.eup %2632 }
 0x230   : > { %v1521_v49 = vadd.f32 %v1520_v21, %v4091_v14  ;;  %v2635_v56 = vpop.eup %2634  ;;  %v1899_v40 = vmul.f32 %v2633_v11, %v4113_v58 }
 0x231   : > { %2636 = vtanh.f32 %v1480_v25  ;;  %v1900_v29 = vmul.f32 %v2635_v56, %v4113_v58 }
 0x232   : > { %2638 = vtanh.f32 %v1521_v49 }
 0x233   : > { %v1558_v3 = vpop.f32.mrf.mxu2 }
 0x234   : > { %v1599_v53 = vpop.f32.mrf.mxu3  ;;  %v1559_v7 = vadd.f32 %v1558_v3, %v4085_v34 }
 0x235   : > { %v1600_v26 = vadd.f32 %v1599_v53, %v4085_v34 }
 0x236   : > { %v1482_v12 = vpop.f32.mrf.mxu0 }
 0x237   : > { %v1523_v33 = vpop.f32.mrf.mxu1  ;;  %v2637_v61 = vpop.eup %2636  ;;  %v1483_v13 = vadd.f32 %v1482_v12, %v4097_v63 }
 0x238   : > { %v1524_v54 = vadd.f32 %v1523_v33, %v4097_v63  ;;  %v2639_v36 = vpop.eup %2638  ;;  %v1907_v39 = vmul.f32 %v2637_v61, %v4115_v24 }
 0x239   : > { %v1908_v41 = vmul.f32 %v2639_v36, %v4115_v24  ;;  %2640 = vtanh.f32 %v1483_v13  ;;  %v4150_v36 = vpop.permute.xlu0 %1432 }
 0x23a   : > { %v1963_v37 = vadd.f32 %v1907_v39, %v1899_v40  ;;  %2642 = vtanh.f32 %v1524_v54 }
 0x23b   : > { %v1561_v51 = vpop.f32.mrf.mxu2  ;;  %v1976_v59 = vadd.f32 %v1908_v41, %v1900_v29  ;;  %2644 = vtanh.f32 %v1559_v7 }
 0x23c   : > { %v1602_v43 = vpop.f32.mrf.mxu3  ;;  %v1562_v5 = vadd.f32 %v1561_v51, %v4091_v14  ;;  %2646 = vtanh.f32 %v1600_v26 }
 0x23d   : > { %v1603_v47 = vadd.f32 %v1602_v43, %v4091_v14 }
 0x23e   : > { %2648 = vtanh.f32 %v1562_v5  ;;  %v1485_v30 = vpop.f32.mrf.mxu0 }
 0x23f   : > { %2650 = vtanh.f32 %v1603_v47  ;;  %v1526_v50 = vpop.f32.mrf.mxu1  ;;  %v2641_v22 = vpop.eup %2640  ;;  %v1486_v46 = vadd.f32 %v1485_v30, %v4103_v44 }
 0x240   : > { %v1527_v48 = vadd.f32 %v1526_v50, %v4103_v44  ;;  %v2643_v27 = vpop.eup %2642  ;;  %v1915_v17 = vmul.f32 %v2641_v22, %v4129_v35 }
 0x241   : > { %v2645_v52 = vpop.eup %2644  ;;  %v1916_v2 = vmul.f32 %v2643_v27, %v4129_v35  ;;  %2652 = vtanh.f32 %v1486_v46 }
 0x242   : > { %v2647_v45 = vpop.eup %2646  ;;  %v1964_v20 = vadd.f32 %v1963_v37, %v1915_v17  ;;  %2654 = vtanh.f32 %v1527_v48  ;;  %v1901_v55 = vmul.f32 %v2645_v52, %v4113_v58  ;;  %v4153_v37 = vpop.permute.xlu2 %1881 }
 0x243   : > { %v1564_v16 = vpop.f32.mrf.mxu2  ;;  %v1977_v23 = vadd.f32 %v1976_v59, %v1916_v2  ;;  %v1902_v42 = vmul.f32 %v2647_v45, %v4113_v58 }
 0x244   : > { %v1605_v8 = vpop.f32.mrf.mxu3  ;;  %v2649_v6 = vpop.eup %2648  ;;  %v1565_v1 = vadd.f32 %v1564_v16, %v4097_v63 }
 0x245   : > { %v1606_v10 = vadd.f32 %v1605_v8, %v4097_v63  ;;  %v2651_v19 = vpop.eup %2650  ;;  %v1909_v9 = vmul.f32 %v2649_v6, %v4115_v24 }
 0x246   : > { %v1910_v15 = vmul.f32 %v2651_v19, %v4115_v24  ;;  %2656 = vtanh.f32 %v1565_v1  ;;  %v1488_v4 = vpop.f32.mrf.mxu0  ;;  %v4163_v1 = vpop.permute.xlu0 %1886 }
 0x247   : > { %v1989_v18 = vadd.f32 %v1909_v9, %v1901_v55  ;;  %2658 = vtanh.f32 %v1606_v10  ;;  %v1529_v0 = vpop.f32.mrf.mxu1  ;;  %v2653_v28 = vpop.eup %2652  ;;  %v1489_v60 = vadd.f32 %v1488_v4, %v4107_v31 }
 0x248   : > { %v2002_v38 = vadd.f32 %v1910_v15, %v1902_v42  ;;  %v1530_v21 = vadd.f32 %v1529_v0, %v4107_v31  ;;  %v2655_v25 = vpop.eup %2654  ;;  %v1923_v49 = vmul.f32 %v2653_v28, %v4141_v32 }
 0x249   : > { %v1924_v3 = vmul.f32 %v2655_v25, %v4141_v32  ;;  %2660 = vtanh.f32 %v1489_v60 }
 0x24a   : > { %v1965_v53 = vadd.f32 %v1964_v20, %v1923_v49  ;;  %2662 = vtanh.f32 %v1530_v21 }
 0x24b   : > { %v1567_v11 = vpop.f32.mrf.mxu2  ;;  %v1978_v33 = vadd.f32 %v1977_v23, %v1924_v3 }
 0x24c   : > { %v1608_v56 = vpop.f32.mrf.mxu3  ;;  %v2657_v12 = vpop.eup %2656  ;;  %v1568_v61 = vadd.f32 %v1567_v11, %v4103_v44 }
 0x24d   : > { %v1609_v7 = vadd.f32 %v1608_v56, %v4103_v44  ;;  %v2659_v13 = vpop.eup %2658  ;;  %v1917_v54 = vmul.f32 %v2657_v12, %v4129_v35 }
 0x24e   : > { %v1918_v40 = vmul.f32 %v2659_v13, %v4129_v35  ;;  %2664 = vtanh.f32 %v1568_v61  ;;  %v1491_v26 = vpop.f32.mrf.mxu0 }
 0x24f   : > { %v1990_v39 = vadd.f32 %v1989_v18, %v1917_v54  ;;  %2666 = vtanh.f32 %v1609_v7  ;;  %v1532_v29 = vpop.f32.mrf.mxu1  ;;  %v2661_v41 = vpop.eup %2660  ;;  %v1492_v43 = vadd.f32 %v1491_v26, %v4111_v62 }
 0x250   : > { %v2003_v51 = vadd.f32 %v2002_v38, %v1918_v40  ;;  %v1533_v59 = vadd.f32 %v1532_v29, %v4111_v62  ;;  %v2663_v5 = vpop.eup %2662  ;;  %v1931_v47 = vmul.f32 %v2661_v41, %v4153_v37 }
 0x251   : > { %v1932_v30 = vmul.f32 %v2663_v5, %v4153_v37  ;;  %2668 = vtanh.f32 %v1492_v43 }
 0x252   : > { %v1966_v50 = vadd.f32 %v1965_v53, %v1931_v47  ;;  %2670 = vtanh.f32 %v1533_v59  ;;  %v4173_v53 = vpop.permute.xlu1 %1891 }
 0x253   : > { %v1570_v22 = vpop.f32.mrf.mxu2  ;;  %v1979_v27 = vadd.f32 %v1978_v33, %v1932_v30 }
 0x254   : > { %v1611_v46 = vpop.f32.mrf.mxu3  ;;  %v2665_v48 = vpop.eup %2664  ;;  %v1571_v17 = vadd.f32 %v1570_v22, %v4107_v31 }
 0x255   : > { %v1612_v52 = vadd.f32 %v1611_v46, %v4107_v31  ;;  %v2667_v2 = vpop.eup %2666  ;;  %v1925_v45 = vmul.f32 %v2665_v48, %v4141_v32 }
 0x256   : > { %v1926_v20 = vmul.f32 %v2667_v2, %v4141_v32  ;;  %2672 = vtanh.f32 %v1571_v17  ;;  %v1494_v8 = vpop.f32.mrf.mxu0 }
 0x257   : > { %v1991_v16 = vadd.f32 %v1990_v39, %v1925_v45  ;;  %2674 = vtanh.f32 %v1612_v52  ;;  %v1535_v6 = vpop.f32.mrf.mxu1  ;;  %v2669_v23 = vpop.eup %2668  ;;  %v1495_v19 = vadd.f32 %v1494_v8, %v4127_v57 }
 0x258   : > { %v2004_v10 = vadd.f32 %v2003_v51, %v1926_v20  ;;  %v1536_v55 = vadd.f32 %v1535_v6, %v4127_v57  ;;  %v2671_v9 = vpop.eup %2670  ;;  %v1939_v42 = vmul.f32 %v2669_v23, %v4163_v1 }
 0x259   : > { %v1940_v15 = vmul.f32 %v2671_v9, %v4163_v1  ;;  %2676 = vtanh.f32 %v1495_v19 }
 0x25a   : > { %v1967_v18 = vadd.f32 %v1966_v50, %v1939_v42  ;;  %2678 = vtanh.f32 %v1536_v55 }
 0x25b   : > { %v1573_v4 = vpop.f32.mrf.mxu2  ;;  %v1980_v38 = vadd.f32 %v1979_v27, %v1940_v15  ;;  %v4183_v27 = vpop.permute.xlu2 %1896 }
 0x25c   : > { %v1614_v0 = vpop.f32.mrf.mxu3  ;;  %v2673_v28 = vpop.eup %2672  ;;  %v1574_v60 = vadd.f32 %v1573_v4, %v4111_v62 }
 0x25d   : > { %v1615_v21 = vadd.f32 %v1614_v0, %v4111_v62  ;;  %v2675_v25 = vpop.eup %2674  ;;  %v1933_v49 = vmul.f32 %v2673_v28, %v4153_v37 }
 0x25e   : > { %v1934_v3 = vmul.f32 %v2675_v25, %v4153_v37  ;;  %2680 = vtanh.f32 %v1574_v60 }
 0x25f   : > { %v1992_v11 = vadd.f32 %v1991_v16, %v1933_v49  ;;  %2682 = vtanh.f32 %v1615_v21  ;;  %v2677_v56 = vpop.eup %2676 }
 0x260   : > { %v2005_v12 = vadd.f32 %v2004_v10, %v1934_v3  ;;  %v1497_v33 = vpop.f32.mrf.mxu0  ;;  %v1538_v61 = vpop.f32.mrf.mxu1  ;;  %v1947_v13 = vmul.f32 %v2677_v56, %v4173_v53 }
 0x261   : > { %v2679_v7 = vpop.eup %2678  ;;  %v1498_v54 = vadd.f32 %v1497_v33, %v4150_v36  ;;  %v1539_v40 = vadd.f32 %v1538_v61, %v4150_v36 }
 0x262   : > { %v1948_v39 = vmul.f32 %v2679_v7, %v4173_v53  ;;  %v1968_v26 = vadd.f32 %v1967_v18, %v1947_v13 }
 0x263   : > { %2684 = vtanh.f32 %v1498_v54  ;;  %v1576_v29 = vpop.f32.mrf.mxu2 }
 0x264   : > { %v1617_v41 = vpop.f32.mrf.mxu3  ;;  %v2681_v51 = vpop.eup %2680  ;;  %v1981_v43 = vadd.f32 %v1980_v38, %v1948_v39  ;;  %2686 = vtanh.f32 %v1539_v40  ;;  %v1577_v59 = vadd.f32 %v1576_v29, %v4127_v57 }
 0x265   : > { %v1618_v5 = vadd.f32 %v1617_v41, %v4127_v57  ;;  %v2683_v47 = vpop.eup %2682  ;;  %v1941_v30 = vmul.f32 %v2681_v51, %v4163_v1 }
 0x266   : > { %v1942_v50 = vmul.f32 %v2683_v47, %v4163_v1  ;;  %2688 = vtanh.f32 %v1577_v59 }
 0x267   : > { %v1993_v22 = vadd.f32 %v1992_v11, %v1941_v30  ;;  %2690 = vtanh.f32 %v1618_v5 }
 0x268   : > { %v2006_v46 = vadd.f32 %v2005_v12, %v1942_v50 }
 0x269   : > { %v2685_v48 = vpop.eup %2684 }
 0x26a   : > { %v2687_v17 = vpop.eup %2686  ;;  %v1955_v52 = vmul.f32 %v2685_v48, %v4183_v27  ;;  %v1640_v2 = vpop.f32.mrf.mxu0 }
 0x26b   : > { %v1681_v45 = vpop.f32.mrf.mxu1  ;;  %v1956_v20 = vmul.f32 %v2687_v17, %v4183_v27  ;;  %v2071_v48 = vpop.permute.xlu0 %2070 }
 0x26c   : > { %v2689_v16 = vpop.eup %2688  ;;  %v1969_v8 = vadd.f32 %v1968_v26, %v1955_v52 }
 0x26d   : > { %v2691_v6 = vpop.eup %2690  ;;  %v1982_v23 = vadd.f32 %v1981_v43, %v1956_v20  ;;  %v1949_v10 = vmul.f32 %v2689_v16, %v4173_v53  ;;  %v1579_v19 = vpop.f32.mrf.mxu2  ;;  %v4197_v16 = vperm.slane %v2071_v48, 0 }
 0x26e   : > { %v1620_v55 = vpop.f32.mrf.mxu3  ;;  %v1950_v9 = vmul.f32 %v2691_v6, %v4173_v53  ;;  %v1580_v42 = vadd.f32 %v1579_v19, %v4150_v36  ;;  %v1970_v38 = vrot.slane %v1969_v8, 4 }
 0x26f   : > { %v1994_v15 = vadd.f32 %v1993_v22, %v1949_v10  ;;  %v1621_v18 = vadd.f32 %v1620_v55, %v4150_v36  ;;  %v1983_v60 = vrot.slane %v1982_v23, 4 }
 0x270   : > { %v2007_v4 = vadd.f32 %v2006_v46, %v1950_v9  ;;  %2692 = vtanh.f32 %v1580_v42  ;;  %v1971_v56 = vadd.f32 %v1970_v38, %v1969_v8  ;;  %v1641_v9 = vadd.f32 %v1640_v2, %v4085_v34 }
 0x271   : > { %2694 = vtanh.f32 %v1621_v18  ;;  %v1984_v12 = vadd.f32 %v1983_v60, %v1982_v23  ;;  %v1682_v42 = vadd.f32 %v1681_v45, %v4085_v34 }
 0x272   : > { %v1643_v0 = vpop.f32.mrf.mxu0  ;;  %v1972_v40 = vrot.slane %v1971_v56, 2  ;;  %2696 = vtanh.f32 %v1641_v9 }
 0x273   : > { %v1684_v28 = vpop.f32.mrf.mxu1  ;;  %v1985_v39 = vrot.slane %v1984_v12, 2  ;;  %v1644_v60 = vadd.f32 %v1643_v0, %v4091_v14  ;;  %2698 = vtanh.f32 %v1682_v42 }
 0x274   : > { %v1973_v51 = vadd.f32 %v1972_v40, %v1971_v56 }
 0x275   : > { %v1986_v43 = vadd.f32 %v1985_v39, %v1984_v12  ;;  %2700 = vtanh.f32 %v1644_v60 }
 0x276   : > { %v2693_v21 = vpop.eup %2692  ;;  %v1722_v25 = vpop.f32.mrf.mxu2  ;;  %v1974_v50 = vrot.slane %v1973_v51, 1 }
 0x277   : > { %v1763_v49 = vpop.f32.mrf.mxu3  ;;  %v2695_v3 = vpop.eup %2694  ;;  %v1957_v11 = vmul.f32 %v2693_v21, %v4183_v27  ;;  %v1987_v22 = vrot.slane %v1986_v43, 1  ;;  %v1685_v21 = vadd.f32 %v1684_v28, %v4091_v14  ;;  %v1723_v2 = vadd.f32 %v1722_v25, %v4085_v34 }
 0x278   : > { %v1958_v33 = vmul.f32 %v2695_v3, %v4183_v27  ;;  %v1975_v6 = vadd.f32 %v1974_v50, %v1973_v51  ;;  %v2697_v51 = vpop.eup %2696 }
 0x279   : > { %v1995_v61 = vadd.f32 %v1994_v15, %v1957_v11  ;;  %v1988_v23 = vadd.f32 %v1987_v22, %v1986_v43  ;;  %2702 = vtanh.f32 %v1685_v21 }
 0x27a   : > { %v2008_v7 = vadd.f32 %v2007_v4, %v1958_v33  ;;  %v1646_v13 = vpop.f32.mrf.mxu0  ;;  %v2074_v4 = vadd.f32 %v4197_v16, %v1975_v6  ;;  %v1764_v33 = vadd.f32 %v1763_v49, %v4085_v34  ;;  %2704 = vtanh.f32 %v1723_v2 }
 0x27b   : > { %v1687_v54 = vpop.f32.mrf.mxu1  ;;  %v1996_v41 = vrot.slane %v1995_v61, 4  ;;  %v2075_v55 = vadd.f32 %v4197_v16, %v1988_v23 }
 0x27c   : > { %v2009_v59 = vrot.slane %v2008_v7, 4  ;;  %v1688_v0 = vadd.f32 %v1687_v54, %v4097_v63  ;;  %2706 = vtanh.f32 %v1764_v33 }
 0x27d   : > { %v1997_v30 = vadd.f32 %v1996_v41, %v1995_v61  ;;  %v2090_v38 = vrot.slane %v2075_v55, 7  ;;  %v1647_v61 = vadd.f32 %v1646_v13, %v4097_v63  ;;  %v2699_v13 = vpop.eup %2698 }
 0x27e   : > { %v1725_v26 = vpop.f32.mrf.mxu2  ;;  %v2010_v46 = vadd.f32 %v2009_v59, %v2008_v7 }
 0x27f   : > { %v1766_v29 = vpop.f32.mrf.mxu3  ;;  %v1998_v20 = vrot.slane %v1997_v30, 2  ;;  %v2098_v56 = vsel %vm2097_vm1, %v2074_v4, %v2090_v38  ;;  %v1726_v40 = vadd.f32 %v1725_v26, %v4091_v14  ;;  %2708 = vtanh.f32 %v1647_v61 }
 0x280   : > { %v2011_v8 = vrot.slane %v2010_v46, 2  ;;  %2710 = vtanh.f32 %v1688_v0  ;;  %v1767_v54 = vadd.f32 %v1766_v29, %v4091_v14 }
 0x281   : > { %v1999_v15 = vadd.f32 %v1998_v20, %v1997_v30  ;;  %v2701_v30 = vpop.eup %2700  ;;  %2712 = vtanh.f32 %v1726_v40 }
 0x282   : > { %v1649_v5 = vpop.f32.mrf.mxu0  ;;  %v2012_v18 = vadd.f32 %v2011_v8, %v2010_v46  ;;  %v2703_v22 = vpop.eup %2702 }
 0x283   : > { %v1690_v47 = vpop.f32.mrf.mxu1  ;;  %v2000_v12 = vrot.slane %v1999_v15, 1  ;;  %v1650_v41 = vadd.f32 %v1649_v5, %v4103_v44  ;;  %v4223_v48 = vpop.eup %2704  ;;  %v1912_v60 = vmul.f32 %v2703_v22, %v4115_v24 }
 0x284   : > { %v2013_v45 = vrot.slane %v2012_v18, 1  ;;  %v1691_v34 = vadd.f32 %v1690_v47, %v4103_v44  ;;  %v4226_v29 = vpop.eup %2706 }
 0x285   : > { %v2001_v39 = vadd.f32 %v2000_v12, %v1999_v15  ;;  %2714 = vtanh.f32 %v1650_v41 }
 0x286   : > { %v4193_v17 = vpop.f32.mrf.mxu2  ;;  %v2014_v25 = vadd.f32 %v2013_v45, %v2012_v18  ;;  %2716 = vtanh.f32 %v1691_v34  ;;  %v1911_v18 = vmul.f32 %v2701_v30, %v4115_v24  ;;  %v1903_v45 = vmul.f32 %v2697_v51, %v4113_v58 }
 0x287   : > { %v4195_v52 = vpop.f32.mrf.mxu3  ;;  %v2076_v49 = vadd.f32 %v4197_v16, %v2001_v39  ;;  %2718 = vtanh.f32 %v1767_v54  ;;  %v1729_v4 = vadd.f32 %v4193_v17, %v4097_v63  ;;  %v1904_v17 = vmul.f32 %v2699_v13, %v4113_v58 }
 0x288   : > { %v2077_v26 = vadd.f32 %v4197_v16, %v2014_v25  ;;  %v1770_v21 = vadd.f32 %v4195_v52, %v4097_v63  ;;  %v2015_v52 = vadd.f32 %v1911_v18, %v1903_v45  ;;  %v1905_v45 = vmul.f32 %v4223_v48, %v4113_v58 }
 0x289   : > { %v2091_v50 = vrot.slane %v2076_v49, 6  ;;  %v2028_v39 = vadd.f32 %v1912_v60, %v1904_v17 }
 0x28a   : > { %v1652_v10 = vpop.f32.mrf.mxu0  ;;  %v2092_v46 = vrot.slane %v2077_v26, 5 }
 0x28b   : > { %v1693_v19 = vpop.f32.mrf.mxu1  ;;  %v1653_v5 = vadd.f32 %v1652_v10, %v4107_v31  ;;  %v2709_v10 = vpop.eup %2708 }
 0x28c   : > { %v1694_v47 = vadd.f32 %v1693_v19, %v4107_v31  ;;  %v2100_v23 = vsel %vm2099_vm2, %v2091_v50, %v2092_v46  ;;  %v2711_v9 = vpop.eup %2710  ;;  %v1919_v0 = vmul.f32 %v2709_v10, %v4129_v35 }
 0x28d   : > { %2720 = vtanh.f32 %v1653_v5  ;;  %v4230_v55 = vsel %vm2101_vm3, %v2098_v56, %v2100_v23  ;;  %v4233_v15 = vpop.eup %2712 }
 0x28e   : > { %v4205_v3 = vpop.f32.mrf.mxu2  ;;  %2722 = vtanh.f32 %v1694_v47  ;;  %v2715_v38 = vpop.eup %2714  ;;  %v2016_v54 = vadd.f32 %v2015_v52, %v1919_v0 }
 0x28f   : > { %v4207_v11 = vpop.f32.mrf.mxu3  ;;  %v2717_v2 = vpop.eup %2716  ;;  %v1732_v33 = vadd.f32 %v4205_v3, %v4103_v44  ;;  %v1927_v41 = vmul.f32 %v2715_v38, %v4141_v32 }
 0x290   : > { %v2719_v61 = vpop.eup %2718  ;;  %v1928_v3 = vmul.f32 %v2717_v2, %v4141_v32 }
 0x291   : > { %v2017_v46 = vadd.f32 %v2016_v54, %v1927_v41 }
 0x292   : > { %v1655_v28 = vpop.f32.mrf.mxu0 }
 0x293   : > { %v1696_v7 = vpop.f32.mrf.mxu1  ;;  %v1656_v14 = vadd.f32 %v1655_v28, %v4111_v62  ;;  %v1773_v28 = vadd.f32 %v4207_v11, %v4103_v44  ;;  %v2721_v63 = vpop.eup %2720 }
 0x294   : > { %v1697_v20 = vadd.f32 %v1696_v7, %v4111_v62  ;;  %v1920_v7 = vmul.f32 %v2711_v9, %v4129_v35  ;;  %v2723_v40 = vpop.eup %2722  ;;  %v1935_v26 = vmul.f32 %v2721_v63, %v4153_v37 }
 0x295   : > { %2724 = vtanh.f32 %v1656_v14  ;;  %v1936_v22 = vmul.f32 %v2723_v40, %v4153_v37 }
 0x296   : > { %v1734_v43 = vpop.f32.mrf.mxu2  ;;  %2726 = vtanh.f32 %v1697_v20  ;;  %v2029_v50 = vadd.f32 %v2028_v39, %v1920_v7  ;;  %v2018_v9 = vadd.f32 %v2017_v46, %v1935_v26 }
 0x297   : > { %v4218_v59 = vpop.f32.mrf.mxu3  ;;  %v1735_v49 = vadd.f32 %v1734_v43, %v4107_v31 }
 0x298   : > { %v1776_v30 = vadd.f32 %v4218_v59, %v4107_v31  ;;  %v2030_v10 = vadd.f32 %v2029_v50, %v1928_v3 }
 0x29a   : > { %v1658_v8 = vpop.f32.mrf.mxu0  ;;  %v2031_v38 = vadd.f32 %v2030_v10, %v1936_v22 }
 0x29b   : > { %v1699_v6 = vpop.f32.mrf.mxu1  ;;  %v1659_v19 = vadd.f32 %v1658_v8, %v4127_v57  ;;  %v2725_v34 = vpop.eup %2724 }
 0x29c   : > { %v1700_v42 = vadd.f32 %v1699_v6, %v4127_v57  ;;  %v2727_v13 = vpop.eup %2726  ;;  %v1943_v14 = vmul.f32 %v2725_v34, %v4163_v1 }
 0x29d   : > { %2728 = vtanh.f32 %v1659_v19  ;;  %v1944_v31 = vmul.f32 %v2727_v13, %v4163_v1 }
 0x29e   : > { %v1737_v56 = vpop.f32.mrf.mxu2  ;;  %2730 = vtanh.f32 %v1700_v42 }
 0x29f   : > { %v1778_v12 = vpop.f32.mrf.mxu3  ;;  %2732 = vtanh.f32 %v1729_v4  ;;  %v1738_v47 = vadd.f32 %v1737_v56, %v4111_v62  ;;  %v1914_v56 = vmul.f32 %v2719_v61, %v4115_v24 }
 0x2a0   : > { %2734 = vtanh.f32 %v1770_v21  ;;  %v1779_v20 = vadd.f32 %v1778_v12, %v4111_v62  ;;  %v1913_v21 = vmul.f32 %v4233_v15, %v4115_v24  ;;  %v2019_v12 = vadd.f32 %v2018_v9, %v1943_v14 }
 0x2a1   : > { %2736 = vtanh.f32 %v1732_v33  ;;  %v2032_v33 = vadd.f32 %v2031_v38, %v1944_v31 }
 0x2a2   : > { %v1661_v25 = vpop.f32.mrf.mxu0  ;;  %2738 = vtanh.f32 %v1773_v28  ;;  %v2041_v48 = vadd.f32 %v1913_v21, %v1905_v45 }
 0x2a3   : > { %v1702_v51 = vpop.f32.mrf.mxu1  ;;  %v1662_v44 = vadd.f32 %v1661_v25, %v4150_v36  ;;  %v2729_v5 = vpop.eup %2728 }
 0x2a4   : > { %v1703_v11 = vadd.f32 %v1702_v51, %v4150_v36  ;;  %v2731_v43 = vpop.eup %2730  ;;  %v1951_v42 = vmul.f32 %v2729_v5, %v4173_v53 }
 0x2a5   : > { %2740 = vtanh.f32 %v1662_v44  ;;  %v2733_v23 = vpop.eup %2732  ;;  %v1952_v62 = vmul.f32 %v2731_v43, %v4173_v53 }
 0x2a6   : > { %2742 = vtanh.f32 %v1703_v11  ;;  %v1740_v8 = vpop.f32.mrf.mxu2  ;;  %v2735_v19 = vpop.eup %2734  ;;  %v1921_v0 = vmul.f32 %v2733_v23, %v4129_v35  ;;  %v2020_v28 = vadd.f32 %v2019_v12, %v1951_v42 }
 0x2a7   : > { %v1781_v6 = vpop.f32.mrf.mxu3  ;;  %2744 = vtanh.f32 %v1735_v49  ;;  %v1741_v59 = vadd.f32 %v1740_v8, %v4127_v57  ;;  %v2737_v4 = vpop.eup %2736  ;;  %v1922_v24 = vmul.f32 %v2735_v19, %v4129_v35  ;;  %v2033_v61 = vadd.f32 %v2032_v33, %v1952_v62 }
 0x2a8   : > { %2746 = vtanh.f32 %v1776_v30  ;;  %v1782_v18 = vadd.f32 %v1781_v6, %v4127_v57  ;;  %v2739_v60 = vpop.eup %2738  ;;  %v1906_v57 = vmul.f32 %v4226_v29, %v4113_v58  ;;  %v1929_v58 = vmul.f32 %v2737_v4, %v4141_v32 }
 0x2a9   : > { %2748 = vtanh.f32 %v1738_v47  ;;  %v1930_v25 = vmul.f32 %v2739_v60, %v4141_v32  ;;  %v2042_v44 = vadd.f32 %v2041_v48, %v1921_v0 }
 0x2aa   : > { %2750 = vtanh.f32 %v1779_v20  ;;  %v2054_v40 = vadd.f32 %v1914_v56, %v1906_v57 }
 0x2ab   : > { %v2741_v2 = vpop.eup %2740  ;;  %2752 = vtanh.f32 %v1741_v59  ;;  %v2043_v22 = vadd.f32 %v2042_v44, %v1929_v58 }
 0x2ac   : > { %v2743_v17 = vpop.eup %2742  ;;  %v1959_v63 = vmul.f32 %v2741_v2, %v4183_v27  ;;  %2754 = vtanh.f32 %v1782_v18  ;;  %v2055_v26 = vadd.f32 %v2054_v40, %v1922_v24 }
 0x2ad   : > { %v2745_v15 = vpop.eup %2744  ;;  %v1960_v52 = vmul.f32 %v2743_v17, %v4183_v27 }
 0x2ae   : > { %v2747_v7 = vpop.eup %2746  ;;  %v2021_v29 = vadd.f32 %v2020_v28, %v1959_v63  ;;  %v1743_v39 = vpop.f32.mrf.mxu2  ;;  %v1937_v11 = vmul.f32 %v2745_v15, %v4153_v37  ;;  %v2056_v43 = vadd.f32 %v2055_v26, %v1930_v25 }
 0x2af   : > { %v1784_v41 = vpop.f32.mrf.mxu3  ;;  %v2749_v3 = vpop.eup %2748  ;;  %v2034_v51 = vadd.f32 %v2033_v61, %v1960_v52  ;;  %v1744_v34 = vadd.f32 %v1743_v39, %v4150_v36  ;;  %v1938_v30 = vmul.f32 %v2747_v7, %v4153_v37 }
 0x2b0   : > { %v1785_v49 = vadd.f32 %v1784_v41, %v4150_v36  ;;  %v2751_v35 = vpop.eup %2750  ;;  %v2022_v13 = vrot.slane %v2021_v29, 4  ;;  %v1945_v32 = vmul.f32 %v2749_v3, %v4163_v1  ;;  %v2044_v14 = vadd.f32 %v2043_v22, %v1937_v11 }
 0x2b1   : > { %v2753_v54 = vpop.eup %2752  ;;  %v2035_v5 = vrot.slane %v2034_v51, 4  ;;  %2756 = vtanh.f32 %v1744_v34  ;;  %v1946_v36 = vmul.f32 %v2751_v35, %v4163_v1  ;;  %v2057_v8 = vadd.f32 %v2056_v43, %v1938_v30 }
 0x2b2   : > { %v2755_v50 = vpop.eup %2754  ;;  %v2023_v47 = vadd.f32 %v2022_v13, %v2021_v29  ;;  %2758 = vtanh.f32 %v1785_v49  ;;  %v1953_v20 = vmul.f32 %v2753_v54, %v4173_v53  ;;  %v2045_v10 = vadd.f32 %v2044_v14, %v1945_v32 }
 0x2b3   : > { %v2036_v46 = vadd.f32 %v2035_v5, %v2034_v51  ;;  %v1954_v37 = vmul.f32 %v2755_v50, %v4173_v53  ;;  %v2058_v59 = vadd.f32 %v2057_v8, %v1946_v36 }
 0x2b4   : > { %v2024_v6 = vrot.slane %v2023_v47, 2  ;;  %v2046_v9 = vadd.f32 %v2045_v10, %v1953_v20 }
 0x2b5   : > { %v2037_v23 = vrot.slane %v2036_v46, 2  ;;  %v2059_v1 = vadd.f32 %v2058_v59, %v1954_v37 }
 0x2b6   : > { %v2025_v18 = vadd.f32 %v2024_v6, %v2023_v47 }
 0x2b7   : > { %v2757_v31 = vpop.eup %2756  ;;  %v2038_v4 = vadd.f32 %v2037_v23, %v2036_v46 }
 0x2b8   : > { %v2759_v19 = vpop.eup %2758  ;;  %v1961_v42 = vmul.f32 %v2757_v31, %v4183_v27  ;;  %v2026_v56 = vrot.slane %v2025_v18, 1 }
 0x2b9   : > { %v1962_v38 = vmul.f32 %v2759_v19, %v4183_v27  ;;  %v2039_v12 = vrot.slane %v2038_v4, 1 }
 0x2ba   : > { %v2047_v62 = vadd.f32 %v2046_v9, %v1961_v42  ;;  %v2027_v17 = vadd.f32 %v2026_v56, %v2025_v18 }
 0x2bb   : > { %v2060_v60 = vadd.f32 %v2059_v1, %v1962_v38  ;;  %v2040_v0 = vadd.f32 %v2039_v12, %v2038_v4 }
 0x2bc   : > { %v2048_v21 = vrot.slane %v2047_v62, 4  ;;  %v2078_v27 = vadd.f32 %v4197_v16, %v2027_v17 }
 0x2bd   : > { %v2061_v53 = vrot.slane %v2060_v60, 4  ;;  %v2079_v61 = vadd.f32 %v4197_v16, %v2040_v0 }
 0x2be   : > { %v2049_v2 = vadd.f32 %v2048_v21, %v2047_v62  ;;  %v2093_v58 = vrot.slane %v2078_v27, 4 }
 0x2bf   : > { %v2062_v45 = vadd.f32 %v2061_v53, %v2060_v60  ;;  %v2094_v29 = vrot.slane %v2079_v61, 3 }
 0x2c0   : > { %v2050_v57 = vrot.slane %v2049_v2, 2 }
 0x2c1   : > { %v2063_v33 = vrot.slane %v2062_v45, 2  ;;  %v2104_v3 = vsel %vm2103_vm4, %v2093_v58, %v2094_v29 }
 0x2c2   : > { %v2051_v28 = vadd.f32 %v2050_v57, %v2049_v2 }
 0x2c3   : > { %v2064_v63 = vadd.f32 %v2063_v33, %v2062_v45 }
 0x2c4   : > { %v2052_v15 = vrot.slane %v2051_v28, 1 }
 0x2c5   : > { %v2065_v24 = vrot.slane %v2064_v63, 1 }
 0x2c6   : > { %v2053_v52 = vadd.f32 %v2052_v15, %v2051_v28 }
 0x2c7   : > { %v2066_v7 = vadd.f32 %v2065_v24, %v2064_v63 }
 0x2c8   : > { %v2080_v48 = vadd.f32 %v4197_v16, %v2053_v52 }
 0x2c9   : > { %v2081_v40 = vadd.f32 %v4197_v16, %v2066_v7 }
 0x2ca   : > { %v2095_v39 = vrot.slane %v2080_v48, 2 }
 0x2cb   : > { %v2096_v41 = vrot.slane %v2081_v40, 1 }
 0x2cd   : > { %v2106_v25 = vsel %vm2105_vm5, %v2095_v39, %v2096_v41 }
 0x2ce   : > { %v2108_v51 = vsel %vm2107_vm6, %v2104_v3, %v2106_v25 }
 0x2cf   : > { %v2110_v16 = vsel %vm2109_vm7, %v4230_v55, %v2108_v51 }
 0x2d0   : > { %2112 = vst [vmem:[%s394_s12] sm:$0xff] %v2110_v16 }
 0x2d1   : > { %2787 = shalt.err (!%p2784_p3)
}
 0x2d2   : > { %2333 = dma.vmem_to_hbm [thread:$0]  (%p2925_p5), %s2127_s13, 128, %s2129_s2, %s2114_s18  }
 0x2d3 PF: > { %p2339_p4 = scmp.ge.s32.totalorder %s2822_s22, 2  ;;  %s2140_s17 = sand.u32 1, %s2810_s19  }
 0x2d4   : > { %s2141_s26 = scalar_lea.sflag [#allocation4], %s2140_s17 }
 0x2d5   : > { %p2336_p7 = pnand %p2339_p4, %p2929_p6 }
 0x2d7   : > { %p2337_p8 = pneg %p2336_p7 }
 0x2d9   : > { %2805 = dma.done.wait (%p2337_p8), %s2141_s26, 128  }
 0x2da   : > { %2807 = vsyncadd (%p2337_p8), %s2141_s26, 4294967168  ;;  %p23_p9 = scmp.ge.s32.totalorder %s2911_s24, 4   ;;  %s4378_s19 = smov %s2814_s20 }
 0x2db   : > { %s4379_s20 = smov %s2818_s21  ;;  %s4380_s21 = smov %s2923_s27 }
 0x2dc   : > { %s4381_s22 = smov %s2911_s24  ;;  %25 = sbr.rel (!%p23_p9) target bundleno = 6 (0x6), region = 102 }
 0x2e1   :  { %2147 = vsyncpa [#allocation4], 1 }
 0x2e2   :  { %2149 = vsyncpa [#allocation4 + $0x1], 1 }

</bundles_post_ra>
